<compile_context>
chip_gen: v7x
topology: tpu7x:2x2x1
jax: 0.10.0
libtpu: 0.0.40
codegen_flags: <defaults>
</compile_context>

<pallas_src>
import functools

import jax
import jax.numpy as jnp
from jax.experimental import pallas as pl
from jax.experimental.pallas import tpu as pltpu


# ---------------------------------------------------------------------------
# Fused VAE forward kernel (one batch-tile per grid step)
# ---------------------------------------------------------------------------
def _vae_fwd_kernel(
    x_ref, eps_ref,
    w_enc_ref, b_enc_ref,
    w_mulv_ref, b_mulv_ref,
    w_d1_ref, b_d1_ref,
    w_d2_ref, b_d2_ref,
    recon_ref, mu_ref, lv_ref,
):
    L = mu_ref.shape[1]

    x = x_ref[...].astype(jnp.bfloat16)                       # (TB, D) bf16 for MXU
    eps = eps_ref[...]                                        # (TB, L) f32

    # --- encoder ---
    h = jnp.dot(x, w_enc_ref[...], preferred_element_type=jnp.float32)
    h = jnp.maximum(h + b_enc_ref[...], 0.0)                  # ReLU, (TB, H) f32

    # --- fused mu / logvar projection: one (TB,H) x (H,2L) matmul ---
    mulv = jnp.dot(h.astype(jnp.bfloat16), w_mulv_ref[...],
                   preferred_element_type=jnp.float32) + b_mulv_ref[...]
    mu = mulv[:, :L]                                          # 128-aligned slices
    lv = mulv[:, L:]

    # --- reparameterization: z = mu + exp(0.5 * logvar) * eps (EUP exp) ---
    z = mu + jnp.exp(0.5 * lv) * eps                          # (TB, L) f32

    # --- decoder ---
    h2 = jnp.dot(z.astype(jnp.bfloat16), w_d1_ref[...],
                 preferred_element_type=jnp.float32)
    h2 = jnp.maximum(h2 + b_d1_ref[...], 0.0)                 # ReLU, (TB, H)

    logits = jnp.dot(h2.astype(jnp.bfloat16), w_d2_ref[...],
                     preferred_element_type=jnp.float32) + b_d2_ref[...]

    recon_ref[...] = jax.nn.sigmoid(logits)                   # (TB, D) f32
    mu_ref[...] = mu
    lv_ref[...] = lv


def _round_up(v, m):
    return ((v + m - 1) // m) * m


def _vmem_budget_bytes(tb, d, h, l):
    """Scoped-VMEM limit sized to actual residency (I/O tiles double-buffered)."""
    bf16, f32 = 2, 4
    weights = (d * h + h * 2 * l + l * h + h * d) * bf16
    biases = (2 * h + 2 * l + d) * f32
    io_tiles = (tb * d + tb * l) * f32 * 2          # x, eps (double-buffered)
    out_tiles = (tb * d + 2 * tb * l) * f32 * 2     # recon, mu, lv
    acts = (2 * tb * h + tb * 2 * l + tb * d) * f32
    total = weights + biases + io_tiles + out_tiles + acts + (8 << 20)
    return int(min(max(total, 32 << 20), 56 << 20))


def _choose_tile_b(B, D, H, L):
    """Largest batch tile that fits the VMEM budget; tiny batches -> one tile."""
    if B <= 128:
        return _round_up(B, 8)
    for tb in (512, 256, 128):
        if _vmem_budget_bytes(tb, D, H, L) < (48 << 20):
            return tb
    return 128


@functools.partial(jax.jit, static_argnames=("tile_b",))
def _vae_forward(x_flat, eps, params, tile_b):
    B, D = x_flat.shape
    L = eps.shape[1]
    Hh = params["w_enc"].shape[1]
    TB = tile_b
    Bp = _round_up(B, TB)

    # Row-only padding, fused into the XLA graph (no extra eager HBM trip).
    if Bp != B:
        x_flat_p = jnp.pad(x_flat, ((0, Bp - B), (0, 0)))
        eps_p = jnp.pad(eps, ((0, Bp - B), (0, 0)))
    else:
        x_flat_p, eps_p = x_flat, eps

    grid = (Bp // TB,)

    def row_spec(feat):
        return pl.BlockSpec((TB, feat), lambda i: (i, 0))

    def const_spec(shape):
        return pl.BlockSpec(shape, lambda i: (0, 0))          # VMEM-resident

    recon, mu, lv = pl.pallas_call(
        _vae_fwd_kernel,
        out_shape=(
            jax.ShapeDtypeStruct((Bp, D), jnp.float32),
            jax.ShapeDtypeStruct((Bp, L), jnp.float32),
            jax.ShapeDtypeStruct((Bp, L), jnp.float32),
        ),
        grid_spec=pltpu.PrefetchScalarGridSpec(
            num_scalar_prefetch=0,
            grid=grid,
            in_specs=[
                row_spec(D),                                   # x
                row_spec(L),                                   # eps
                const_spec(params["w_enc"].shape),             # (D, H) bf16
                const_spec(params["b_enc"].shape),
                const_spec(params["w_mulv"].shape),            # (H, 2L) bf16
                const_spec(params["b_mulv"].shape),
                const_spec(params["w_d1"].shape),              # (L, H) bf16
                const_spec(params["b_d1"].shape),
                const_spec(params["w_d2"].shape),              # (H, D) bf16
                const_spec(params["b_d2"].shape),
            ],
            out_specs=[row_spec(D), row_spec(L), row_spec(L)],
        ),
        compiler_params=pltpu.CompilerParams(
            dimension_semantics=("parallel",),
            vmem_limit_bytes=_vmem_budget_bytes(TB, D, Hh, L),
        ),
    )(
        x_flat_p, eps_p,
        params["w_enc"], params["b_enc"],
        params["w_mulv"], params["b_mulv"],
        params["w_d1"], params["b_d1"],
        params["w_d2"], params["b_d2"],
    )
    return recon[:B], mu[:B], lv[:B]


def diffuse_vae_forward(x_nchw, params, eps):
    """DiffuseVAE.forward(x) -> self.vae(x) == (recon, mu, logvar)."""
    B, C, Hs, Ws = x_nchw.shape
    D = C * Hs * Ws
    L = eps.shape[1]
    Hh = params["w_enc"].shape[1]
    # Guard: keep all feature dims lane-aligned so outputs store unmasked.
    assert D % 128 == 0 and L % 128 == 0 and Hh % 128 == 0, (
        "feature dims (D, latent, hidden) must be multiples of 128")

    x_flat = x_nchw.reshape(B, D)                              # == x.view(B, -1)
    TB = _choose_tile_b(B, D, Hh, L)

    recon_flat, mu, lv = _vae_forward(x_flat, eps, params, TB)
    return recon_flat.reshape(B, C, Hs, Ws), mu, lv


# ---------------------------------------------------------------------------
# Deterministic parameter construction (synthetic VAE weights, bf16)
# ---------------------------------------------------------------------------
def make_vae_params(key, in_dim, hidden_dim, latent_dim):
    ks = jax.random.split(key, 5)
    s = 0.02
    w_enc = s * jax.random.normal(ks[0], (in_dim, hidden_dim), jnp.float32)
    w_mu = s * jax.random.normal(ks[1], (hidden_dim, latent_dim), jnp.float32)
    w_lv = s * jax.random.normal(ks[2], (hidden_dim, latent_dim), jnp.float32)
    w_d1 = s * jax.random.normal(ks[3], (latent_dim, hidden_dim), jnp.float32)
    w_d2 = s * jax.random.normal(ks[4], (hidden_dim, in_dim), jnp.float32)
    return {
        # bf16 weights: MXU-native dtype, halves weight DMA + VMEM footprint
        "w_enc":  w_enc.astype(jnp.bfloat16),
        "b_enc":  jnp.zeros((1, hidden_dim), jnp.float32),
        # fused mu/logvar projection weight: (H, 2L)
        "w_mulv": jnp.concatenate([w_mu, w_lv], axis=1).astype(jnp.bfloat16),
        "b_mulv": jnp.zeros((1, 2 * latent_dim), jnp.float32),
        "w_d1":   w_d1.astype(jnp.bfloat16),
        "b_d1":   jnp.zeros((1, hidden_dim), jnp.float32),
        "w_d2":   w_d2.astype(jnp.bfloat16),
        "b_d2":   jnp.zeros((1, in_dim), jnp.float32),
    }


if __name__ == "__main__":
    # small shapes consistent with the module's forward
    B, C, Hs, Ws = 2, 4, 16, 16
    HIDDEN = 256
    LATENT = 128          # stand-in for latent_dim (default 512, shrunk for test)
    D = C * Hs * Ws       # 1024

    key = jax.random.PRNGKey(0)
    k_x, k_eps, k_p = jax.random.split(key, 3)

    x = jax.random.normal(k_x, (B, C, Hs, Ws), jnp.float32)
    eps = jax.random.normal(k_eps, (B, LATENT), jnp.float32)   # reparam noise
    params = make_vae_params(k_p, D, HIDDEN, LATENT)

    recon, mu, logvar = diffuse_vae_forward(x, params, eps)
    jax.block_until_ready((recon, mu, logvar))

    assert recon.shape == (B, C, Hs, Ws)
    assert mu.shape == (B, LATENT) and logvar.shape == (B, LATENT)
    assert bool(jnp.all(jnp.isfinite(recon)))
    assert bool(jnp.all((recon >= 0.0) & (recon <= 1.0)))      # sigmoid range

    # TODO(synk): DiffuseVAE.sample() / decode() call the DDPM sampler, which
    # is an iterative host-side loop over an external model and is out of
    # scope for this forward-pass kernel.
    print("KERNEL_OK")
</pallas_src>

<mosaic_0001>
module attributes {stable_mosaic.version = 11 : i64} {
  func.func @_vae_fwd_kernel(%arg0: i32, %arg1: memref<8x1024xf32, #tpu.memory_space<vmem>>, %arg2: memref<8x128xf32, #tpu.memory_space<vmem>>, %arg3: memref<1024x256xbf16, #tpu.memory_space<vmem>>, %arg4: memref<1x256xf32, #tpu.memory_space<vmem>>, %arg5: memref<256x256xbf16, #tpu.memory_space<vmem>>, %arg6: memref<1x256xf32, #tpu.memory_space<vmem>>, %arg7: memref<128x256xbf16, #tpu.memory_space<vmem>>, %arg8: memref<1x256xf32, #tpu.memory_space<vmem>>, %arg9: memref<256x1024xbf16, #tpu.memory_space<vmem>>, %arg10: memref<1x1024xf32, #tpu.memory_space<vmem>>, %arg11: memref<8x1024xf32, #tpu.memory_space<vmem>>, %arg12: memref<8x128xf32, #tpu.memory_space<vmem>>, %arg13: memref<8x128xf32, #tpu.memory_space<vmem>>) attributes {dimension_semantics = [#tpu.dimension_semantics<parallel>], iteration_bounds = array<i64: 1>, scalar_prefetch = 0 : i64, scratch_operands = 0 : i64, tpu.core_type = #tpu.core_type<tc>, window_params = [{transform_indices = @transform_0, window_bounds = array<i64: 8, 1024>}, {transform_indices = @transform_1, window_bounds = array<i64: 8, 128>}, {pipeline_mode = #tpu.pipeline_mode<synchronous>, transform_indices = @transform_2, window_bounds = array<i64: 1024, 256>}, {pipeline_mode = #tpu.pipeline_mode<synchronous>, transform_indices = @transform_3, window_bounds = array<i64: 1, 256>}, {pipeline_mode = #tpu.pipeline_mode<synchronous>, transform_indices = @transform_4, window_bounds = array<i64: 256, 256>}, {pipeline_mode = #tpu.pipeline_mode<synchronous>, transform_indices = @transform_5, window_bounds = array<i64: 1, 256>}, {pipeline_mode = #tpu.pipeline_mode<synchronous>, transform_indices = @transform_6, window_bounds = array<i64: 128, 256>}, {pipeline_mode = #tpu.pipeline_mode<synchronous>, transform_indices = @transform_7, window_bounds = array<i64: 1, 256>}, {pipeline_mode = #tpu.pipeline_mode<synchronous>, transform_indices = @transform_8, window_bounds = array<i64: 256, 1024>}, {pipeline_mode = #tpu.pipeline_mode<synchronous>, transform_indices = @transform_9, window_bounds = array<i64: 1, 1024>}, {transform_indices = @transform_10, window_bounds = array<i64: 8, 1024>}, {transform_indices = @transform_11, window_bounds = array<i64: 8, 128>}, {transform_indices = @transform_12, window_bounds = array<i64: 8, 128>}]} {
    %c0 = arith.constant 0 : index
    %c0_0 = arith.constant 0 : index
    %0 = vector.load %arg1[%c0, %c0_0] : memref<8x1024xf32, #tpu.memory_space<vmem>>, vector<8x1024xf32>
    %1 = arith.truncf %0 : vector<8x1024xf32> to vector<8x1024xbf16>
    %c0_1 = arith.constant 0 : index
    %c0_2 = arith.constant 0 : index
    %2 = vector.load %arg2[%c0_1, %c0_2] : memref<8x128xf32, #tpu.memory_space<vmem>>, vector<8x128xf32>
    %c0_3 = arith.constant 0 : index
    %c0_4 = arith.constant 0 : index
    %3 = vector.load %arg3[%c0_3, %c0_4] : memref<1024x256xbf16, #tpu.memory_space<vmem>>, vector<1024x256xbf16>
    %cst = arith.constant dense<0.000000e+00> : vector<8x256xf32>
    %4 = tpu.matmul %1, %3, %cst {dimension_numbers = #tpu.dot_dimension_numbers<[1], [0], [0], [1], [0, 0, 1, 1], [], []>} : vector<8x1024xbf16>, vector<1024x256xbf16>, vector<8x256xf32> -> vector<8x256xf32>
    %c0_5 = arith.constant 0 : index
    %c0_6 = arith.constant 0 : index
    %5 = vector.load %arg4[%c0_5, %c0_6] : memref<1x256xf32, #tpu.memory_space<vmem>>, vector<1x256xf32>
    %6 = vector.broadcast %5 : vector<1x256xf32> to vector<8x256xf32>
    %7 = arith.addf %4, %6 : vector<8x256xf32>
    %cst_7 = arith.constant 0.000000e+00 : f32
    %8 = vector.broadcast %cst_7 : f32 to vector<8x256xf32>
    %9 = arith.maximumf %7, %8 : vector<8x256xf32>
    %10 = arith.truncf %9 : vector<8x256xf32> to vector<8x256xbf16>
    %c0_8 = arith.constant 0 : index
    %c0_9 = arith.constant 0 : index
    %11 = vector.load %arg5[%c0_8, %c0_9] : memref<256x256xbf16, #tpu.memory_space<vmem>>, vector<256x256xbf16>
    %cst_10 = arith.constant dense<0.000000e+00> : vector<8x256xf32>
    %12 = tpu.matmul %10, %11, %cst_10 {dimension_numbers = #tpu.dot_dimension_numbers<[1], [0], [0], [1], [0, 0, 1, 1], [], []>} : vector<8x256xbf16>, vector<256x256xbf16>, vector<8x256xf32> -> vector<8x256xf32>
    %c0_11 = arith.constant 0 : index
    %c0_12 = arith.constant 0 : index
    %13 = vector.load %arg6[%c0_11, %c0_12] : memref<1x256xf32, #tpu.memory_space<vmem>>, vector<1x256xf32>
    %14 = vector.broadcast %13 : vector<1x256xf32> to vector<8x256xf32>
    %15 = arith.addf %12, %14 : vector<8x256xf32>
    %16 = vector.extract_strided_slice %15 {offsets = [0, 0], sizes = [8, 128], strides = [1, 1]} : vector<8x256xf32> to vector<8x128xf32>
    %17 = vector.extract_strided_slice %15 {offsets = [0, 128], sizes = [8, 128], strides = [1, 1]} : vector<8x256xf32> to vector<8x128xf32>
    %cst_13 = arith.constant 5.000000e-01 : f32
    %18 = vector.broadcast %cst_13 : f32 to vector<8x128xf32>
    %19 = arith.mulf %18, %17 : vector<8x128xf32>
    %20 = math.exp %19 : vector<8x128xf32>
    %21 = arith.mulf %20, %2 : vector<8x128xf32>
    %22 = arith.addf %16, %21 : vector<8x128xf32>
    %23 = arith.truncf %22 : vector<8x128xf32> to vector<8x128xbf16>
    %c0_14 = arith.constant 0 : index
    %c0_15 = arith.constant 0 : index
    %24 = vector.load %arg7[%c0_14, %c0_15] : memref<128x256xbf16, #tpu.memory_space<vmem>>, vector<128x256xbf16>
    %cst_16 = arith.constant dense<0.000000e+00> : vector<8x256xf32>
    %25 = tpu.matmul %23, %24, %cst_16 {dimension_numbers = #tpu.dot_dimension_numbers<[1], [0], [0], [1], [0, 0, 1, 1], [], []>} : vector<8x128xbf16>, vector<128x256xbf16>, vector<8x256xf32> -> vector<8x256xf32>
    %c0_17 = arith.constant 0 : index
    %c0_18 = arith.constant 0 : index
    %26 = vector.load %arg8[%c0_17, %c0_18] : memref<1x256xf32, #tpu.memory_space<vmem>>, vector<1x256xf32>
    %27 = vector.broadcast %26 : vector<1x256xf32> to vector<8x256xf32>
    %28 = arith.addf %25, %27 : vector<8x256xf32>
    %cst_19 = arith.constant 0.000000e+00 : f32
    %29 = vector.broadcast %cst_19 : f32 to vector<8x256xf32>
    %30 = arith.maximumf %28, %29 : vector<8x256xf32>
    %31 = arith.truncf %30 : vector<8x256xf32> to vector<8x256xbf16>
    %c0_20 = arith.constant 0 : index
    %c0_21 = arith.constant 0 : index
    %32 = vector.load %arg9[%c0_20, %c0_21] : memref<256x1024xbf16, #tpu.memory_space<vmem>>, vector<256x1024xbf16>
    %cst_22 = arith.constant dense<0.000000e+00> : vector<8x1024xf32>
    %33 = tpu.matmul %31, %32, %cst_22 {dimension_numbers = #tpu.dot_dimension_numbers<[1], [0], [0], [1], [0, 0, 1, 1], [], []>} : vector<8x256xbf16>, vector<256x1024xbf16>, vector<8x1024xf32> -> vector<8x1024xf32>
    %c0_23 = arith.constant 0 : index
    %c0_24 = arith.constant 0 : index
    %34 = vector.load %arg10[%c0_23, %c0_24] : memref<1x1024xf32, #tpu.memory_space<vmem>>, vector<1x1024xf32>
    %35 = vector.broadcast %34 : vector<1x1024xf32> to vector<8x1024xf32>
    %36 = arith.addf %33, %35 : vector<8x1024xf32>
    %37 = arith.negf %36 : vector<8x1024xf32>
    %38 = math.exp %37 : vector<8x1024xf32>
    %cst_25 = arith.constant 1.000000e+00 : f32
    %39 = vector.broadcast %cst_25 : f32 to vector<8x1024xf32>
    %40 = arith.addf %39, %38 : vector<8x1024xf32>
    %41 = arith.divf %39, %40 : vector<8x1024xf32>
    %c0_26 = arith.constant 0 : index
    %c0_27 = arith.constant 0 : index
    %42 = vector.load %arg11[%c0_26, %c0_27] : memref<8x1024xf32, #tpu.memory_space<vmem>>, vector<8x1024xf32>
    tpu.vector_store %arg11[%c0_26, %c0_27], %41 {strides = array<i32>} : memref<8x1024xf32, #tpu.memory_space<vmem>>, vector<8x1024xf32>,
    %c0_28 = arith.constant 0 : index
    %c0_29 = arith.constant 0 : index
    %43 = vector.load %arg12[%c0_28, %c0_29] : memref<8x128xf32, #tpu.memory_space<vmem>>, vector<8x128xf32>
    tpu.vector_store %arg12[%c0_28, %c0_29], %16 {strides = array<i32>} : memref<8x128xf32, #tpu.memory_space<vmem>>, vector<8x128xf32>,
    %c0_30 = arith.constant 0 : index
    %c0_31 = arith.constant 0 : index
    %44 = vector.load %arg13[%c0_30, %c0_31] : memref<8x128xf32, #tpu.memory_space<vmem>>, vector<8x128xf32>
    tpu.vector_store %arg13[%c0_30, %c0_31], %17 {strides = array<i32>} : memref<8x128xf32, #tpu.memory_space<vmem>>, vector<8x128xf32>,
    return
  }
  func.func @transform_0(%arg0: i32) -> (i32, i32) {
    %c0_i32 = arith.constant 0 : i32
    %c0_i32_0 = arith.constant 0 : i32
    return %arg0, %c0_i32 : i32, i32
  }
  func.func @transform_1(%arg0: i32) -> (i32, i32) {
    %c0_i32 = arith.constant 0 : i32
    %c0_i32_0 = arith.constant 0 : i32
    return %arg0, %c0_i32 : i32, i32
  }
  func.func @transform_2(%arg0: i32) -> (i32, i32) {
    %c0_i32 = arith.constant 0 : i32
    %c0_i32_0 = arith.constant 0 : i32
    %c0_i32_1 = arith.constant 0 : i32
    return %c0_i32, %c0_i32_0 : i32, i32
  }
  func.func @transform_3(%arg0: i32) -> (i32, i32) {
    %c0_i32 = arith.constant 0 : i32
    %c0_i32_0 = arith.constant 0 : i32
    %c0_i32_1 = arith.constant 0 : i32
    return %c0_i32, %c0_i32_0 : i32, i32
  }
  func.func @transform_4(%arg0: i32) -> (i32, i32) {
    %c0_i32 = arith.constant 0 : i32
    %c0_i32_0 = arith.constant 0 : i32
    %c0_i32_1 = arith.constant 0 : i32
    return %c0_i32, %c0_i32_0 : i32, i32
  }
  func.func @transform_5(%arg0: i32) -> (i32, i32) {
    %c0_i32 = arith.constant 0 : i32
    %c0_i32_0 = arith.constant 0 : i32
    %c0_i32_1 = arith.constant 0 : i32
    return %c0_i32, %c0_i32_0 : i32, i32
  }
  func.func @transform_6(%arg0: i32) -> (i32, i32) {
    %c0_i32 = arith.constant 0 : i32
    %c0_i32_0 = arith.constant 0 : i32
    %c0_i32_1 = arith.constant 0 : i32
    return %c0_i32, %c0_i32_0 : i32, i32
  }
  func.func @transform_7(%arg0: i32) -> (i32, i32) {
    %c0_i32 = arith.constant 0 : i32
    %c0_i32_0 = arith.constant 0 : i32
    %c0_i32_1 = arith.constant 0 : i32
    return %c0_i32, %c0_i32_0 : i32, i32
  }
  func.func @transform_8(%arg0: i32) -> (i32, i32) {
    %c0_i32 = arith.constant 0 : i32
    %c0_i32_0 = arith.constant 0 : i32
    %c0_i32_1 = arith.constant 0 : i32
    return %c0_i32, %c0_i32_0 : i32, i32
  }
  func.func @transform_9(%arg0: i32) -> (i32, i32) {
    %c0_i32 = arith.constant 0 : i32
    %c0_i32_0 = arith.constant 0 : i32
    %c0_i32_1 = arith.constant 0 : i32
    return %c0_i32, %c0_i32_0 : i32, i32
  }
  func.func @transform_10(%arg0: i32) -> (i32, i32) {
    %c0_i32 = arith.constant 0 : i32
    %c0_i32_0 = arith.constant 0 : i32
    return %arg0, %c0_i32 : i32, i32
  }
  func.func @transform_11(%arg0: i32) -> (i32, i32) {
    %c0_i32 = arith.constant 0 : i32
    %c0_i32_0 = arith.constant 0 : i32
    return %arg0, %c0_i32 : i32, i32
  }
  func.func @transform_12(%arg0: i32) -> (i32, i32) {
    %c0_i32 = arith.constant 0 : i32
    %c0_i32_0 = arith.constant 0 : i32
    return %arg0, %c0_i32 : i32, i32
  }
}

</mosaic_0001>

<bundles_post_ra>
// kernel: _vae_forward.1
= control target key start
LH: loop header
LB: loop body
LE: loop exit
PB: predicated region body
PF: predicated region fallthrough
CT: control target
= control target key end

     0   :  { %18 = vsyncpa [#allocation3], 0  ;;  %s3506_s0 = inlined_call_operand.vmem [shape: f32[8,1024], index: 0, kind: input, shape index: {}]   ;;  %s3507_s1 = inlined_call_operand.vmem [shape: f32[8,128], index: 1, kind: input, shape index: {}]   ;;  %s3508_s2 = inlined_call_operand.hbm [shape: bf16[1024,256], index: 2, kind: input, shape index: {}]   ;;  %s3509_s3 = inlined_call_operand.vmem [shape: f32[1,256], index: 3, kind: input, shape index: {}]   ;;  %s3510_s4 = inlined_call_operand.hbm [shape: bf16[256,256], index: 4, kind: input, shape index: {}]   ;;  %s3511_s5 = inlined_call_operand.vmem [shape: f32[1,256], index: 5, kind: input, shape index: {}]   ;;  %s3512_s6 = inlined_call_operand.hbm [shape: bf16[128,256], index: 6, kind: input, shape index: {}]   ;;  %s3513_s7 = inlined_call_operand.vmem [shape: f32[1,256], index: 7, kind: input, shape index: {}]   ;;  %s3514_s8 = inlined_call_operand.hbm [shape: bf16[256,1024], index: 8, kind: input, shape index: {}]   ;;  %s3515_s9 = inlined_call_operand.vmem [shape: f32[1,1024], index: 9, kind: input, shape index: {}]   ;;  %s3516_s10 = inlined_call_operand.vmem [shape: f32[8,1024], index: 10, kind: output, shape index: {0}]   ;;  %s3517_s11 = inlined_call_operand.vmem [shape: f32[8,128], index: 11, kind: output, shape index: {1}]   ;;  %s3518_s12 = inlined_call_operand.vmem [shape: f32[8,128], index: 12, kind: output, shape index: {2}]  }
   0x1   :  { %19 = vsyncpa [#allocation5], 0 }
   0x2   :  { %20 = vsyncpa [#allocation8], 0  ;;  %s3237_s21 = smov [#allocation4]   ;;  %s3238_s23 = smov [#allocation2]  }
   0x3   :  { %s44_s22 = sshll.u32 %s3237_s21, 4  ;;  %s30_s24 = sshll.u32 %s3238_s23, 4  ;;  %s45_s22 = int_to_ptr.vmem [resolvable:$true] %s44_s22  ;;  %s3311_s24 = int_to_ptr.vmem [resolvable:$true] %s30_s24 }
   0x4   :  { %s3143_s27 = scalar_lea.hbm %s3510_s4, 4096 }
   0x5   :  { %p3144_p0 = scmp.ne.s32.totalorder %s3510_s4, %s3143_s27  ;;  %p3147_p1 = scmp.lt.u32.totalorder %s3143_s27, %s3510_s4 }
   0x7   :  { %p3149_p2 = pnand %p3147_p1, %p3144_p0 }
   0x9   :  { %3152 = shalt.err (!%p3149_p2)
}
   0xa   :  { %s3153_s14 = scalar_lea.vmem %s45_s22, 4096  ;;  %p3158_p4 = scmp.lt.s32.totalorder %s45_s22, %s45_s22 }
   0xb   :  { %p3154_p3 = scmp.ne.s32.totalorder %s45_s22, %s3153_s14  ;;  %p3159_p5 = scmp.lt.s32.totalorder %s3153_s14, %s3153_s14 }
   0xd   :  { %p3160_p6 = por %p3159_p5, %p3158_p4 }
   0xf   :  { %p3161_p7 = pnand %p3160_p6, %p3154_p3 }
  0x11   :  { %3164 = shalt.err (!%p3161_p7)
}
  0x12   :  { %s3239_s15 = smov 128   ;;  %s3240_s16 = smov 8  }
  0x13   :  { %50 = dma.hbm_to_vmem [thread:$0]  %s3510_s4, 4096, %s45_s22, [#allocation5], %s3239_s15, %s3239_s15, %s3240_s16  }
  0x14   :  { %s3165_s21 = scalar_lea.hbm %s3508_s2, 16384 }
  0x15   :  { %p3166_p8 = scmp.ne.s32.totalorder %s3508_s2, %s3165_s21  ;;  %p3169_p9 = scmp.lt.u32.totalorder %s3165_s21, %s3508_s2 }
  0x17   :  { %p3171_p10 = pnand %p3169_p9, %p3166_p8 }
  0x19   :  { %3174 = shalt.err (!%p3171_p10)
}
  0x1a   :  { %s3175_s28 = scalar_lea.vmem %s3311_s24, 16384  ;;  %p3180_p12 = scmp.lt.s32.totalorder %s3311_s24, %s3311_s24 }
  0x1b   :  { %p3176_p11 = scmp.ne.s32.totalorder %s3311_s24, %s3175_s28  ;;  %p3181_p13 = scmp.lt.s32.totalorder %s3175_s28, %s3175_s28 }
  0x1d   :  { %p3182_p0 = por %p3181_p13, %p3180_p12 }
  0x1f   :  { %p3183_p1 = pnand %p3182_p0, %p3176_p11 }
  0x21   :  { %3186 = shalt.err (!%p3183_p1)
}
  0x22   :  { %36 = dma.hbm_to_vmem [thread:$0]  %s3508_s2, 16384, %s3311_s24, [#allocation3], %s3239_s15, %s3239_s15, %s3240_s16  }
  0x23   :  { %s3241_s29 = smov [#allocation6]   ;;  %s3242_s13 = smov [#allocation7]  }
  0x24   :  { %s58_s30 = sshll.u32 %s3241_s29, 4  ;;  %s72_s14 = sshll.u32 %s3242_s13, 4  ;;  %s59_s30 = int_to_ptr.vmem [resolvable:$true] %s58_s30  ;;  %s3348_s14 = int_to_ptr.vmem [resolvable:$true] %s72_s14 }
  0x25   :  { %s3187_s19 = scalar_lea.hbm %s3512_s6, 2048 }
  0x26   :  { %p3188_p2 = scmp.ne.s32.totalorder %s3512_s6, %s3187_s19  ;;  %p3191_p3 = scmp.lt.u32.totalorder %s3187_s19, %s3512_s6 }
  0x28   :  { %p3193_p4 = pnand %p3191_p3, %p3188_p2 }
  0x2a   :  { %3196 = shalt.err (!%p3193_p4)
}
  0x2b   :  { %s3197_s2 = scalar_lea.vmem %s59_s30, 2048  ;;  %p3202_p6 = scmp.lt.s32.totalorder %s59_s30, %s59_s30 }
  0x2c   :  { %p3198_p5 = scmp.ne.s32.totalorder %s59_s30, %s3197_s2  ;;  %p3203_p7 = scmp.lt.s32.totalorder %s3197_s2, %s3197_s2 }
  0x2e   :  { %p3204_p8 = por %p3203_p7, %p3202_p6 }
  0x30   :  { %p3205_p9 = pnand %p3204_p8, %p3198_p5 }
  0x32   :  { %3208 = shalt.err (!%p3205_p9)
}
  0x33   :  { %64 = dma.hbm_to_vmem [thread:$0]  %s3512_s6, 2048, %s59_s30, [#allocation5], %s3239_s15, %s3239_s15, %s3240_s16  }
  0x34   :  { %s3209_s4 = scalar_lea.hbm %s3514_s8, 16384 }
  0x35   :  { %p3210_p10 = scmp.ne.s32.totalorder %s3514_s8, %s3209_s4  ;;  %p3213_p11 = scmp.lt.u32.totalorder %s3209_s4, %s3514_s8 }
  0x37   :  { %p3215_p12 = pnand %p3213_p11, %p3210_p10 }
  0x39   :  { %3218 = shalt.err (!%p3215_p12)
}
  0x3a   :  { %s3219_s18 = scalar_lea.vmem %s3348_s14, 16384  ;;  %p3224_p0 = scmp.lt.s32.totalorder %s3348_s14, %s3348_s14 }
  0x3b   :  { %p3220_p13 = scmp.ne.s32.totalorder %s3348_s14, %s3219_s18  ;;  %p3225_p1 = scmp.lt.s32.totalorder %s3219_s18, %s3219_s18 }
  0x3d   :  { %p3226_p2 = por %p3225_p1, %p3224_p0 }
  0x3f   :  { %p3227_p3 = pnand %p3226_p2, %p3220_p13 }
  0x41   :  { %3230 = shalt.err (!%p3227_p3)
}
  0x42   :  { %s3243_s6 = smov 512   ;;  %s3244_s15 = smov 32  }
  0x43   :  { %78 = dma.hbm_to_vmem [thread:$0]  %s3514_s8, 16384, %s3348_s14, [#allocation8], %s3243_s6, %s3243_s6, %s3244_s15  }
  0x44   :  { %3231 = dma.done.wait [#allocation3], 16384  }
  0x45   :  { %3232 = vsyncadd [#allocation3], 4294950912 }
  0x46   :  { %3233 = dma.done.wait [#allocation5], 6144  }
  0x47   :  { %3234 = vsyncadd [#allocation5], 4294961152 }
  0x48   :  { %3235 = dma.done.wait [#allocation8], 16384  }
  0x49   :  { %3236 = vsyncadd [#allocation8], 4294950912  ;;  %v2845_v0 = vld [vmem:[#allocation2 + $0x4] ss:$8 sps:$4 sm:$0xff]   ;;  %v2847_v1 = vld [vmem:[#allocation2] ss:$8 sps:$4 sm:$0xff]  }
  0x4a   :  { %891 = vmatprep.subr.bf16.mxu0 %v2845_v0  ;;  %v2848_v2 = vld [vmem:[#allocation2 + $0x14] ss:$8 sps:$4 sm:$0xff]   ;;  %v2850_v3 = vld [vmem:[#allocation2 + $0x10] ss:$8 sps:$4 sm:$0xff]   ;;  %v2851_v4 = vld [vmem:[#allocation2 + $0x24] ss:$8 sps:$4 sm:$0xff]  }
  0x4b   :  { %892 = vmatpush1.bf16.msra.mxu0 %v2847_v1  ;;  %v2853_v5 = vld [vmem:[#allocation2 + $0x20] ss:$8 sps:$4 sm:$0xff]   ;;  %v2854_v6 = vld [vmem:[#allocation2 + $0x34] ss:$8 sps:$4 sm:$0xff]   ;;  %v2856_v7 = vld [vmem:[#allocation2 + $0x30] ss:$8 sps:$4 sm:$0xff]  }
  0x4c   :  { %893 = vmatprep.subr.bf16.mxu0 %v2848_v2  ;;  %v2857_v8 = vld [vmem:[#allocation2 + $0x44] ss:$8 sps:$4 sm:$0xff]   ;;  %v2859_v9 = vld [vmem:[#allocation2 + $0x40] ss:$8 sps:$4 sm:$0xff]   ;;  %v2860_v10 = vld [vmem:[#allocation2 + $0x54] ss:$8 sps:$4 sm:$0xff]  }
  0x4d   :  { %v2862_v11 = vld [vmem:[#allocation2 + $0x50] ss:$8 sps:$4 sm:$0xff]   ;;  %v2863_v12 = vld [vmem:[#allocation2 + $0x64] ss:$8 sps:$4 sm:$0xff]   ;;  %v2865_v15 = vld [vmem:[#allocation2 + $0x60] ss:$8 sps:$4 sm:$0xff]  }
  0x4e   :  { %v95_v13 = vld [vmem:[%s3506_s0 + $0x8] sm:$0xff]  ;;  %v2866_v16 = vld [vmem:[#allocation2 + $0x74] ss:$8 sps:$4 sm:$0xff]   ;;  %v2868_v17 = vld [vmem:[#allocation2 + $0x70] ss:$8 sps:$4 sm:$0xff]  }
  0x4f   :  { %894 = vmatpush1.bf16.msra.mxu0 %v2850_v3  ;;  %v103_v14 = vpack.c.bf16 %v95_v13, %v95_v13  ;;  %v2869_v18 = vld [vmem:[#allocation2 + $0x84] ss:$8 sps:$4 sm:$0xff]   ;;  %v2871_v19 = vld [vmem:[#allocation2 + $0x80] ss:$8 sps:$4 sm:$0xff]   ;;  %v2872_v20 = vld [vmem:[#allocation2 + $0x94] ss:$8 sps:$4 sm:$0xff]  }
  0x50   :  { %895 = vmatprep.subr.bf16.mxu0 %v2851_v4  ;;  %v2874_v21 = vld [vmem:[#allocation2 + $0x90] ss:$8 sps:$4 sm:$0xff]   ;;  %v2875_v22 = vld [vmem:[#allocation2 + $0xa4] ss:$8 sps:$4 sm:$0xff]   ;;  %v2877_v23 = vld [vmem:[#allocation2 + $0xa0] ss:$8 sps:$4 sm:$0xff]  }
  0x51   :  { %923 = vmatprep.mubr.bf16.mxu0 %v103_v14  ;;  %v2878_v24 = vld [vmem:[#allocation2 + $0xb4] ss:$8 sps:$4 sm:$0xff]   ;;  %v2880_v25 = vld [vmem:[#allocation2 + $0xb0] ss:$8 sps:$4 sm:$0xff]   ;;  %v2881_v26 = vld [vmem:[#allocation2 + $0xc4] ss:$8 sps:$4 sm:$0xff]  }
  0x52   :  { %v2883_v27 = vld [vmem:[#allocation2 + $0xc0] ss:$8 sps:$4 sm:$0xff]   ;;  %v2884_v28 = vld [vmem:[#allocation2 + $0xd4] ss:$8 sps:$4 sm:$0xff]   ;;  %v2886_v29 = vld [vmem:[#allocation2 + $0xd0] ss:$8 sps:$4 sm:$0xff]  }
  0x53   :  { %896 = vmatpush1.bf16.msra.mxu0 %v2853_v5  ;;  %v2887_v30 = vld [vmem:[#allocation2 + $0xe4] ss:$8 sps:$4 sm:$0xff]   ;;  %v2889_v31 = vld [vmem:[#allocation2 + $0xe0] ss:$8 sps:$4 sm:$0xff]   ;;  %v2890_v32 = vld [vmem:[#allocation2 + $0xf4] ss:$8 sps:$4 sm:$0xff]  }
  0x54   :  { %897 = vmatprep.subr.bf16.mxu0 %v2854_v6  ;;  %v2892_v33 = vld [vmem:[#allocation2 + $0xf0] ss:$8 sps:$4 sm:$0xff]   ;;  %v2895_v34 = vld [vmem:[#allocation2 + $0x104] ss:$8 sps:$4 sm:$0xff]   ;;  %v2893_v38 = vld [vmem:[#allocation2 + $0x100] ss:$8 sps:$4 sm:$0xff]  }
  0x55   :  { %v94_v35 = vld [vmem:[%s3506_s0] sm:$0xff]  ;;  %v97_v36 = vld [vmem:[%s3506_s0 + $0x18] sm:$0xff]  ;;  %v96_v6 = vld [vmem:[%s3506_s0 + $0x10] sm:$0xff] }
  0x56   :  { %v102_v37 = vpack.c.bf16 %v94_v35, %v94_v35  ;;  %v105_v39 = vpack.c.bf16 %v97_v36, %v97_v36  ;;  %v2898_v40 = vld [vmem:[#allocation2 + $0x114] ss:$8 sps:$4 sm:$0xff]   ;;  %v2896_v41 = vld [vmem:[#allocation2 + $0x110] ss:$8 sps:$4 sm:$0xff]   ;;  %v2901_v42 = vld [vmem:[#allocation2 + $0x124] ss:$8 sps:$4 sm:$0xff]  }
  0x57   :  { %898 = vmatpush1.bf16.msra.mxu0 %v2856_v7  ;;  %v2899_v43 = vld [vmem:[#allocation2 + $0x120] ss:$8 sps:$4 sm:$0xff]   ;;  %v2904_v44 = vld [vmem:[#allocation2 + $0x134] ss:$8 sps:$4 sm:$0xff]   ;;  %v2902_v45 = vld [vmem:[#allocation2 + $0x130] ss:$8 sps:$4 sm:$0xff]  }
  0x58   :  { %899 = vmatprep.subr.bf16.mxu0 %v2857_v8  ;;  %v2907_v46 = vld [vmem:[#allocation2 + $0x144] ss:$8 sps:$4 sm:$0xff]   ;;  %v2905_v47 = vld [vmem:[#allocation2 + $0x140] ss:$8 sps:$4 sm:$0xff]   ;;  %v2910_v48 = vld [vmem:[#allocation2 + $0x154] ss:$8 sps:$4 sm:$0xff]  }
  0x59   :  { %v2908_v49 = vld [vmem:[#allocation2 + $0x150] ss:$8 sps:$4 sm:$0xff]   ;;  %v2913_v50 = vld [vmem:[#allocation2 + $0x164] ss:$8 sps:$4 sm:$0xff]   ;;  %v2911_v51 = vld [vmem:[#allocation2 + $0x160] ss:$8 sps:$4 sm:$0xff]  }
  0x5a   :  { %v2916_v52 = vld [vmem:[#allocation2 + $0x174] ss:$8 sps:$4 sm:$0xff]   ;;  %v2914_v53 = vld [vmem:[#allocation2 + $0x170] ss:$8 sps:$4 sm:$0xff]   ;;  %v2919_v54 = vld [vmem:[#allocation2 + $0x184] ss:$8 sps:$4 sm:$0xff]  }
  0x5b   :  { %900 = vmatpush1.bf16.msra.mxu0 %v2859_v9  ;;  %v2917_v55 = vld [vmem:[#allocation2 + $0x180] ss:$8 sps:$4 sm:$0xff]   ;;  %v2922_v56 = vld [vmem:[#allocation2 + $0x194] ss:$8 sps:$4 sm:$0xff]   ;;  %v2920_v57 = vld [vmem:[#allocation2 + $0x190] ss:$8 sps:$4 sm:$0xff]   ;;  %v104_v9 = vpack.c.bf16 %v96_v6, %v96_v6 }
  0x5c   :  { %901 = vmatprep.subr.bf16.mxu0 %v2860_v10  ;;  %v2925_v58 = vld [vmem:[#allocation2 + $0x1a4] ss:$8 sps:$4 sm:$0xff]   ;;  %v2923_v59 = vld [vmem:[#allocation2 + $0x1a0] ss:$8 sps:$4 sm:$0xff]   ;;  %v2928_v60 = vld [vmem:[#allocation2 + $0x1b4] ss:$8 sps:$4 sm:$0xff]  }
  0x5d   :  { %v2926_v61 = vld [vmem:[#allocation2 + $0x1b0] ss:$8 sps:$4 sm:$0xff]   ;;  %v2931_v62 = vld [vmem:[#allocation2 + $0x1c4] ss:$8 sps:$4 sm:$0xff]   ;;  %v2929_v63 = vld [vmem:[#allocation2 + $0x1c0] ss:$8 sps:$4 sm:$0xff]  }
  0x5e   :  { %v2934_v0 = vld [vmem:[#allocation2 + $0x1d4] ss:$8 sps:$4 sm:$0xff]   ;;  %v2932_v1 = vld [vmem:[#allocation2 + $0x1d0] ss:$8 sps:$4 sm:$0xff]   ;;  %v2937_v2 = vld [vmem:[#allocation2 + $0x1e4] ss:$8 sps:$4 sm:$0xff]  }
  0x5f   :  { %902 = vmatpush1.bf16.msra.mxu0 %v2862_v11  ;;  %v2935_v3 = vld [vmem:[#allocation2 + $0x1e0] ss:$8 sps:$4 sm:$0xff]   ;;  %v2940_v4 = vld [vmem:[#allocation2 + $0x1f4] ss:$8 sps:$4 sm:$0xff]   ;;  %v2938_v5 = vld [vmem:[#allocation2 + $0x1f0] ss:$8 sps:$4 sm:$0xff]  }
  0x60   :  { %903 = vmatprep.subr.bf16.mxu0 %v2863_v12  ;;  %v2943_v7 = vld [vmem:[#allocation2 + $0x204] ss:$8 sps:$4 sm:$0xff]   ;;  %v2941_v10 = vld [vmem:[#allocation2 + $0x200] ss:$8 sps:$4 sm:$0xff]   ;;  %v2946_v12 = vld [vmem:[#allocation2 + $0x214] ss:$8 sps:$4 sm:$0xff]  }
  0x61   :  { %v99_v8 = vld [vmem:[%s3506_s0 + $0x28] sm:$0xff]  ;;  %v98_v6 = vld [vmem:[%s3506_s0 + $0x20] sm:$0xff] }
  0x62   :  { %v107_v11 = vpack.c.bf16 %v99_v8, %v99_v8  ;;  %v3037_v13 = vld [vmem:[#allocation4 + $0x4] ss:$8 sps:$4 sm:$0xff]   ;;  %v3039_v14 = vld [vmem:[#allocation4] ss:$8 sps:$4 sm:$0xff]   ;;  %v101_v8 = vld [vmem:[%s3506_s0 + $0x38] sm:$0xff] }
  0x63   :  { %904 = vmatpush1.bf16.msra.mxu0 %v2865_v15  ;;  %v3040_v15 = vld [vmem:[#allocation4 + $0x14] ss:$8 sps:$4 sm:$0xff]   ;;  %1263 = vmatprep.subr.bf16.mxu1 %v3037_v13  ;;  %v3055_v35 = vld [vmem:[#allocation4 + $0x64] ss:$8 sps:$4 sm:$0xff]   ;;  %v2959_v36 = vld [vmem:[#allocation2 + $0x260] ss:$8 sps:$4 sm:$0xff]  }
  0x64   :  { %905 = vmatprep.subr.bf16.mxu0 %v2866_v16  ;;  %v2944_v16 = vld [vmem:[#allocation2 + $0x210] ss:$8 sps:$4 sm:$0xff]   ;;  %1264 = vmatpush1.bf16.msra.mxu1 %v3039_v14  ;;  %v2997_v14 = vld [vmem:[#allocation2 + $0x324] ss:$8 sps:$4 sm:$0xff]  }
  0x65   :  { %1265 = vmatprep.subr.bf16.mxu1 %v3040_v15  ;;  %v2992_v13 = vld [vmem:[#allocation2 + $0x310] ss:$8 sps:$4 sm:$0xff]   ;;  %v2995_v15 = vld [vmem:[#allocation2 + $0x320] ss:$8 sps:$4 sm:$0xff]  }
  0x67   :  { %906 = vmatpush1.bf16.msra.mxu0 %v2868_v17  ;;  %v2949_v17 = vld [vmem:[#allocation2 + $0x224] ss:$8 sps:$4 sm:$0xff]  }
  0x68   :  { %907 = vmatprep.subr.bf16.mxu0 %v2869_v18  ;;  %v3042_v18 = vld [vmem:[#allocation4 + $0x10] ss:$8 sps:$4 sm:$0xff]  }
  0x69   :  { %1266 = vmatpush1.bf16.msra.mxu1 %v3042_v18  ;;  %v3003_v18 = vld [vmem:[#allocation2 + $0x344] ss:$8 sps:$4 sm:$0xff]  }
  0x6b   :  { %908 = vmatpush1.bf16.msra.mxu0 %v2871_v19  ;;  %v3043_v19 = vld [vmem:[#allocation4 + $0x24] ss:$8 sps:$4 sm:$0xff]  }
  0x6c   :  { %909 = vmatprep.subr.bf16.mxu0 %v2872_v20  ;;  %v2947_v20 = vld [vmem:[#allocation2 + $0x220] ss:$8 sps:$4 sm:$0xff]   ;;  %1267 = vmatprep.subr.bf16.mxu1 %v3043_v19 }
  0x6d   :  { %v3001_v19 = vld [vmem:[#allocation2 + $0x340] ss:$8 sps:$4 sm:$0xff]  }
  0x6f   :  { %910 = vmatpush1.bf16.msra.mxu0 %v2874_v21  ;;  %v2952_v21 = vld [vmem:[#allocation2 + $0x234] ss:$8 sps:$4 sm:$0xff]  }
  0x70   :  { %911 = vmatprep.subr.bf16.mxu0 %v2875_v22  ;;  %v3045_v22 = vld [vmem:[#allocation4 + $0x20] ss:$8 sps:$4 sm:$0xff]  }
  0x71   :  { %1268 = vmatpush1.bf16.msra.mxu1 %v3045_v22  ;;  %v3009_v22 = vld [vmem:[#allocation2 + $0x364] ss:$8 sps:$4 sm:$0xff]  }
  0x73   :  { %912 = vmatpush1.bf16.msra.mxu0 %v2877_v23  ;;  %v3046_v23 = vld [vmem:[#allocation4 + $0x34] ss:$8 sps:$4 sm:$0xff]  }
  0x74   :  { %913 = vmatprep.subr.bf16.mxu0 %v2878_v24  ;;  %v2950_v24 = vld [vmem:[#allocation2 + $0x230] ss:$8 sps:$4 sm:$0xff]   ;;  %1269 = vmatprep.subr.bf16.mxu1 %v3046_v23  ;;  %v3007_v23 = vld [vmem:[#allocation2 + $0x360] ss:$8 sps:$4 sm:$0xff]  }
  0x77   :  { %914 = vmatpush1.bf16.msra.mxu0 %v2880_v25  ;;  %v2955_v25 = vld [vmem:[#allocation2 + $0x244] ss:$8 sps:$4 sm:$0xff]  }
  0x78   :  { %915 = vmatprep.subr.bf16.mxu0 %v2881_v26  ;;  %v3048_v26 = vld [vmem:[#allocation4 + $0x30] ss:$8 sps:$4 sm:$0xff]  }
  0x79   :  { %1270 = vmatpush1.bf16.msra.mxu1 %v3048_v26  ;;  %v3015_v26 = vld [vmem:[#allocation2 + $0x384] ss:$8 sps:$4 sm:$0xff]  }
  0x7b   :  { %916 = vmatpush1.bf16.msra.mxu0 %v2883_v27  ;;  %v3049_v27 = vld [vmem:[#allocation4 + $0x44] ss:$8 sps:$4 sm:$0xff]  }
  0x7c   :  { %917 = vmatprep.subr.bf16.mxu0 %v2884_v28  ;;  %v2953_v28 = vld [vmem:[#allocation2 + $0x240] ss:$8 sps:$4 sm:$0xff]   ;;  %1271 = vmatprep.subr.bf16.mxu1 %v3049_v27 }
  0x7d   :  { %v3013_v27 = vld [vmem:[#allocation2 + $0x380] ss:$8 sps:$4 sm:$0xff]  }
  0x7f   :  { %918 = vmatpush1.bf16.msra.mxu0 %v2886_v29  ;;  %v2958_v29 = vld [vmem:[#allocation2 + $0x254] ss:$8 sps:$4 sm:$0xff]  }
  0x80   :  { %919 = vmatprep.subr.bf16.mxu0 %v2887_v30  ;;  %v3051_v30 = vld [vmem:[#allocation4 + $0x40] ss:$8 sps:$4 sm:$0xff]  }
  0x81   :  { %1272 = vmatpush1.bf16.msra.mxu1 %v3051_v30  ;;  %v3021_v30 = vld [vmem:[#allocation2 + $0x3a4] ss:$8 sps:$4 sm:$0xff]  }
  0x83   :  { %920 = vmatpush1.bf16.msra.mxu0 %v2889_v31  ;;  %v3052_v31 = vld [vmem:[#allocation4 + $0x54] ss:$8 sps:$4 sm:$0xff]  }
  0x84   :  { %921 = vmatprep.subr.bf16.mxu0 %v2890_v32  ;;  %v2956_v32 = vld [vmem:[#allocation2 + $0x250] ss:$8 sps:$4 sm:$0xff]   ;;  %1273 = vmatprep.subr.bf16.mxu1 %v3052_v31  ;;  %v3019_v31 = vld [vmem:[#allocation2 + $0x3a0] ss:$8 sps:$4 sm:$0xff]  }
  0x87   :  { %922 = vmatpush1.bf16.msra.mxu0 %v2892_v33  ;;  %v2961_v33 = vld [vmem:[#allocation2 + $0x264] ss:$8 sps:$4 sm:$0xff]  }
  0x88   :  { %932 = vmatprep.subr.bf16.mxu0 %v2895_v34  ;;  %v3054_v34 = vld [vmem:[#allocation4 + $0x50] ss:$8 sps:$4 sm:$0xff]  }
  0x89   :  { %1274 = vmatpush1.bf16.msra.mxu1 %v3054_v34  ;;  %v3027_v34 = vld [vmem:[#allocation2 + $0x3c4] ss:$8 sps:$4 sm:$0xff]  }
  0x8a   :  { %924 = vmatmul.mubr.bf16.vlgmr.msra.gmra.mrb[0].mxu0 %v102_v37  ;;  %v2964_v37 = vld [vmem:[#allocation2 + $0x274] ss:$8 sps:$4 sm:$0xff]   ;;  %1275 = vmatprep.subr.bf16.mxu1 %v3055_v35  ;;  %v3025_v35 = vld [vmem:[#allocation2 + $0x3c0] ss:$8 sps:$4 sm:$0xff]  }
  0x8b   :  { %933 = vmatpush1.bf16.msra.mxu0 %v2893_v38  ;;  %964 = vmatprep.mubr.bf16.mxu0 %v105_v39  ;;  %v3057_v38 = vld [vmem:[#allocation4 + $0x60] ss:$8 sps:$4 sm:$0xff]   ;;  %v3058_v39 = vld [vmem:[#allocation4 + $0x74] ss:$8 sps:$4 sm:$0xff]  }
  0x8c   :  { %934 = vmatprep.subr.bf16.mxu0 %v2898_v40  ;;  %v2962_v40 = vld [vmem:[#allocation2 + $0x270] ss:$8 sps:$4 sm:$0xff]  }
  0x8d   :  { %1276 = vmatpush1.bf16.msra.mxu1 %v3057_v38  ;;  %v3033_v38 = vld [vmem:[#allocation2 + $0x3e4] ss:$8 sps:$4 sm:$0xff]  }
  0x8e   :  { %1277 = vmatprep.subr.bf16.mxu1 %v3058_v39  ;;  %v3031_v39 = vld [vmem:[#allocation2 + $0x3e0] ss:$8 sps:$4 sm:$0xff]  }
  0x8f   :  { %935 = vmatpush1.bf16.msra.mxu0 %v2896_v41  ;;  %v2967_v41 = vld [vmem:[#allocation2 + $0x284] ss:$8 sps:$4 sm:$0xff]  }
  0x90   :  { %936 = vmatprep.subr.bf16.mxu0 %v2901_v42  ;;  %v3060_v42 = vld [vmem:[#allocation4 + $0x70] ss:$8 sps:$4 sm:$0xff]  }
  0x91   :  { %1278 = vmatpush1.bf16.msra.mxu1 %v3060_v42  ;;  %v100_v42 = vld [vmem:[%s3506_s0 + $0x30] sm:$0xff] }
  0x93   :  { %937 = vmatpush1.bf16.msra.mxu0 %v2899_v43  ;;  %v3061_v43 = vld [vmem:[#allocation4 + $0x84] ss:$8 sps:$4 sm:$0xff]  }
  0x94   :  { %938 = vmatprep.subr.bf16.mxu0 %v2904_v44  ;;  %v2965_v44 = vld [vmem:[#allocation2 + $0x280] ss:$8 sps:$4 sm:$0xff]   ;;  %1279 = vmatprep.subr.bf16.mxu1 %v3061_v43  ;;  %v108_v43 = vpack.c.bf16 %v100_v42, %v100_v42  ;;  %v1506_v42 = vld [vmem:[#allocation7 + $0x158] sm:$0xff] }
  0x97   :  { %939 = vmatpush1.bf16.msra.mxu0 %v2902_v45  ;;  %v2970_v45 = vld [vmem:[#allocation2 + $0x294] ss:$8 sps:$4 sm:$0xff]  }
  0x98   :  { %940 = vmatprep.subr.bf16.mxu0 %v2907_v46  ;;  %v3063_v46 = vld [vmem:[#allocation4 + $0x80] ss:$8 sps:$4 sm:$0xff]  }
  0x99   :  { %1280 = vmatpush1.bf16.msra.mxu1 %v3063_v46  ;;  %v3082_v46 = vld [vmem:[#allocation4 + $0xf4] ss:$8 sps:$4 sm:$0xff]  }
  0x9b   :  { %941 = vmatpush1.bf16.msra.mxu0 %v2905_v47  ;;  %v3064_v47 = vld [vmem:[#allocation4 + $0x94] ss:$8 sps:$4 sm:$0xff]  }
  0x9c   :  { %942 = vmatprep.subr.bf16.mxu0 %v2910_v48  ;;  %v2968_v48 = vld [vmem:[#allocation2 + $0x290] ss:$8 sps:$4 sm:$0xff]   ;;  %1281 = vmatprep.subr.bf16.mxu1 %v3064_v47 }
  0x9d   :  { %v3084_v47 = vld [vmem:[#allocation4 + $0xf0] ss:$8 sps:$4 sm:$0xff]  }
  0x9f   :  { %943 = vmatpush1.bf16.msra.mxu0 %v2908_v49  ;;  %v2973_v49 = vld [vmem:[#allocation2 + $0x2a4] ss:$8 sps:$4 sm:$0xff]  }
  0xa0   :  { %944 = vmatprep.subr.bf16.mxu0 %v2913_v50  ;;  %v3066_v50 = vld [vmem:[#allocation4 + $0x90] ss:$8 sps:$4 sm:$0xff]  }
  0xa1   :  { %1282 = vmatpush1.bf16.msra.mxu1 %v3066_v50 }
  0xa3   :  { %945 = vmatpush1.bf16.msra.mxu0 %v2911_v51  ;;  %v3067_v51 = vld [vmem:[#allocation4 + $0xa4] ss:$8 sps:$4 sm:$0xff]  }
  0xa4   :  { %946 = vmatprep.subr.bf16.mxu0 %v2916_v52  ;;  %v2971_v52 = vld [vmem:[#allocation2 + $0x2a0] ss:$8 sps:$4 sm:$0xff]   ;;  %1283 = vmatprep.subr.bf16.mxu1 %v3067_v51 }
  0xa7   :  { %947 = vmatpush1.bf16.msra.mxu0 %v2914_v53  ;;  %v2976_v53 = vld [vmem:[#allocation2 + $0x2b4] ss:$8 sps:$4 sm:$0xff]  }
  0xa8   :  { %948 = vmatprep.subr.bf16.mxu0 %v2919_v54  ;;  %v3069_v54 = vld [vmem:[#allocation4 + $0xa0] ss:$8 sps:$4 sm:$0xff]  }
  0xa9   :  { %1284 = vmatpush1.bf16.msra.mxu1 %v3069_v54 }
  0xab   :  { %949 = vmatpush1.bf16.msra.mxu0 %v2917_v55  ;;  %v3070_v55 = vld [vmem:[#allocation4 + $0xb4] ss:$8 sps:$4 sm:$0xff]  }
  0xac   :  { %950 = vmatprep.subr.bf16.mxu0 %v2922_v56  ;;  %v2974_v56 = vld [vmem:[#allocation2 + $0x2b0] ss:$8 sps:$4 sm:$0xff]   ;;  %1285 = vmatprep.subr.bf16.mxu1 %v3070_v55 }
  0xaf   :  { %951 = vmatpush1.bf16.msra.mxu0 %v2920_v57  ;;  %v2979_v57 = vld [vmem:[#allocation2 + $0x2c4] ss:$8 sps:$4 sm:$0xff]  }
  0xb0   :  { %952 = vmatprep.subr.bf16.mxu0 %v2925_v58  ;;  %v3072_v58 = vld [vmem:[#allocation4 + $0xb0] ss:$8 sps:$4 sm:$0xff]  }
  0xb1   :  { %1286 = vmatpush1.bf16.msra.mxu1 %v3072_v58 }
  0xb3   :  { %953 = vmatpush1.bf16.msra.mxu0 %v2923_v59  ;;  %v3073_v59 = vld [vmem:[#allocation4 + $0xc4] ss:$8 sps:$4 sm:$0xff]  }
  0xb4   :  { %954 = vmatprep.subr.bf16.mxu0 %v2928_v60  ;;  %v2977_v60 = vld [vmem:[#allocation2 + $0x2c0] ss:$8 sps:$4 sm:$0xff]   ;;  %1287 = vmatprep.subr.bf16.mxu1 %v3073_v59 }
  0xb7   :  { %955 = vmatpush1.bf16.msra.mxu0 %v2926_v61  ;;  %v2982_v61 = vld [vmem:[#allocation2 + $0x2d4] ss:$8 sps:$4 sm:$0xff]  }
  0xb8   :  { %956 = vmatprep.subr.bf16.mxu0 %v2931_v62  ;;  %v3075_v62 = vld [vmem:[#allocation4 + $0xc0] ss:$8 sps:$4 sm:$0xff]  }
  0xb9   :  { %1288 = vmatpush1.bf16.msra.mxu1 %v3075_v62 }
  0xbb   :  { %957 = vmatpush1.bf16.msra.mxu0 %v2929_v63  ;;  %v3076_v63 = vld [vmem:[#allocation4 + $0xd4] ss:$8 sps:$4 sm:$0xff]  }
  0xbc   :  { %958 = vmatprep.subr.bf16.mxu0 %v2934_v0  ;;  %v2980_v0 = vld [vmem:[#allocation2 + $0x2d0] ss:$8 sps:$4 sm:$0xff]   ;;  %1289 = vmatprep.subr.bf16.mxu1 %v3076_v63 }
  0xbf   :  { %959 = vmatpush1.bf16.msra.mxu0 %v2932_v1  ;;  %v2985_v1 = vld [vmem:[#allocation2 + $0x2e4] ss:$8 sps:$4 sm:$0xff]  }
  0xc0   :  { %960 = vmatprep.subr.bf16.mxu0 %v2937_v2  ;;  %v3078_v2 = vld [vmem:[#allocation4 + $0xd0] ss:$8 sps:$4 sm:$0xff]  }
  0xc1   :  { %1290 = vmatpush1.bf16.msra.mxu1 %v3078_v2 }
  0xc3   :  { %961 = vmatpush1.bf16.msra.mxu0 %v2935_v3  ;;  %v2983_v3 = vld [vmem:[#allocation2 + $0x2e0] ss:$8 sps:$4 sm:$0xff]  }
  0xc4   :  { %962 = vmatprep.subr.bf16.mxu0 %v2940_v4  ;;  %v2988_v4 = vld [vmem:[#allocation2 + $0x2f4] ss:$8 sps:$4 sm:$0xff]  }
  0xc7   :  { %963 = vmatpush1.bf16.msra.mxu0 %v2938_v5  ;;  %v2986_v5 = vld [vmem:[#allocation2 + $0x2f0] ss:$8 sps:$4 sm:$0xff]  }
  0xc8   :  { %973 = vmatprep.subr.bf16.mxu0 %v2943_v7  ;;  %v2991_v7 = vld [vmem:[#allocation2 + $0x304] ss:$8 sps:$4 sm:$0xff]  }
  0xca   :  { %965 = vmatmul.mubr.bf16.vlgmr.msra.gmra.mrb[0].mxu0 %v104_v9  ;;  %v106_v9 = vpack.c.bf16 %v98_v6, %v98_v6  ;;  %v3091_v6 = vld [vmem:[#allocation6 + $0x20] ss:$8 sps:$4 sm:$0xff]  }
  0xcb   :  { %974 = vmatpush1.bf16.msra.mxu0 %v2941_v10  ;;  %1005 = vmatprep.mubr.bf16.mxu0 %v107_v11  ;;  %v2989_v10 = vld [vmem:[#allocation2 + $0x300] ss:$8 sps:$4 sm:$0xff]   ;;  %v109_v11 = vpack.c.bf16 %v101_v8, %v101_v8  ;;  %v3094_v8 = vld [vmem:[#allocation6 + $0x30] ss:$8 sps:$4 sm:$0xff]  }
  0xcc   :  { %975 = vmatprep.subr.bf16.mxu0 %v2946_v12  ;;  %v2994_v12 = vld [vmem:[#allocation2 + $0x314] ss:$8 sps:$4 sm:$0xff]  }
  0xcf   :  { %976 = vmatpush1.bf16.msra.mxu0 %v2944_v16  ;;  %v3000_v16 = vld [vmem:[#allocation2 + $0x334] ss:$8 sps:$4 sm:$0xff]  }
  0xd0   :  { %977 = vmatprep.subr.bf16.mxu0 %v2949_v17  ;;  %v2998_v17 = vld [vmem:[#allocation2 + $0x330] ss:$8 sps:$4 sm:$0xff]  }
  0xd3   :  { %978 = vmatpush1.bf16.msra.mxu0 %v2947_v20  ;;  %v3006_v20 = vld [vmem:[#allocation2 + $0x354] ss:$8 sps:$4 sm:$0xff]  }
  0xd4   :  { %979 = vmatprep.subr.bf16.mxu0 %v2952_v21  ;;  %v3004_v21 = vld [vmem:[#allocation2 + $0x350] ss:$8 sps:$4 sm:$0xff]  }
  0xd7   :  { %980 = vmatpush1.bf16.msra.mxu0 %v2950_v24  ;;  %v3012_v24 = vld [vmem:[#allocation2 + $0x374] ss:$8 sps:$4 sm:$0xff]  }
  0xd8   :  { %981 = vmatprep.subr.bf16.mxu0 %v2955_v25  ;;  %v3010_v25 = vld [vmem:[#allocation2 + $0x370] ss:$8 sps:$4 sm:$0xff]  }
  0xdb   :  { %982 = vmatpush1.bf16.msra.mxu0 %v2953_v28  ;;  %v3018_v28 = vld [vmem:[#allocation2 + $0x394] ss:$8 sps:$4 sm:$0xff]  }
  0xdc   :  { %983 = vmatprep.subr.bf16.mxu0 %v2958_v29  ;;  %v3016_v29 = vld [vmem:[#allocation2 + $0x390] ss:$8 sps:$4 sm:$0xff]  }
  0xdf   :  { %984 = vmatpush1.bf16.msra.mxu0 %v2956_v32  ;;  %v3024_v32 = vld [vmem:[#allocation2 + $0x3b4] ss:$8 sps:$4 sm:$0xff]  }
  0xe0   :  { %985 = vmatprep.subr.bf16.mxu0 %v2961_v33  ;;  %v3022_v33 = vld [vmem:[#allocation2 + $0x3b0] ss:$8 sps:$4 sm:$0xff]  }
  0xe3   :  { %986 = vmatpush1.bf16.msra.mxu0 %v2959_v36  ;;  %v3030_v36 = vld [vmem:[#allocation2 + $0x3d4] ss:$8 sps:$4 sm:$0xff]  }
  0xe4   :  { %987 = vmatprep.subr.bf16.mxu0 %v2964_v37  ;;  %v3028_v37 = vld [vmem:[#allocation2 + $0x3d0] ss:$8 sps:$4 sm:$0xff]  }
  0xe7   :  { %988 = vmatpush1.bf16.msra.mxu0 %v2962_v40  ;;  %v3036_v40 = vld [vmem:[#allocation2 + $0x3f4] ss:$8 sps:$4 sm:$0xff]  }
  0xe8   :  { %989 = vmatprep.subr.bf16.mxu0 %v2967_v41  ;;  %v3034_v41 = vld [vmem:[#allocation2 + $0x3f0] ss:$8 sps:$4 sm:$0xff]  }
  0xeb   :  { %990 = vmatpush1.bf16.msra.mxu0 %v2965_v44  ;;  %v3079_v44 = vld [vmem:[#allocation4 + $0xe4] ss:$8 sps:$4 sm:$0xff]  }
  0xec   :  { %991 = vmatprep.subr.bf16.mxu0 %v2970_v45  ;;  %v3081_v45 = vld [vmem:[#allocation4 + $0xe0] ss:$8 sps:$4 sm:$0xff]   ;;  %1291 = vmatprep.subr.bf16.mxu1 %v3079_v44 }
  0xed   :  { %1292 = vmatpush1.bf16.msra.mxu1 %v3081_v45 }
  0xee   :  { %1293 = vmatprep.subr.bf16.mxu1 %v3082_v46  ;;  %v1514_v46 = vld [vmem:[#allocation7 + $0x198] sm:$0xff] }
  0xef   :  { %992 = vmatpush1.bf16.msra.mxu0 %v2968_v48  ;;  %v3087_v48 = vld [vmem:[#allocation6 + $0x4] ss:$8 sps:$4 sm:$0xff]  }
  0xf0   :  { %993 = vmatprep.subr.bf16.mxu0 %v2973_v49  ;;  %v241_v49 = vlaneseq }
  0xf1   :  { %1294 = vmatpush1.bf16.msra.mxu1 %v3084_v47  ;;  %v1518_v47 = vld [vmem:[#allocation7 + $0x1b8] sm:$0xff] }
  0xf2   :  { %1418 = vmatprep.subr.bf16.mxu1 %v3087_v48  ;;  %v3406_v50 = vshrl.u32 %v241_v49, 7  ;;  %v2740_v48 = vcombine.low %v1514_v46, %v1518_v47  ;;  %v2741_v49 = vcombine.high %v1514_v46, %v1518_v47  ;;  %v1495_v47 = vld [vmem:[#allocation7 + $0x100] sm:$0xff] }
  0xf3   :  { %994 = vmatpush1.bf16.msra.mxu0 %v2971_v52  ;;  %v239_v52 = vld [vmem:[%s3509_s3] sm:$0x3] }
  0xf4   :  { %995 = vmatprep.subr.bf16.mxu0 %v2976_v53  ;;  %v3409_v51 = vsub.s32 0, %v3406_v50  ;;  %v3415_v53 = vsub.s32 1, %v3406_v50 }
  0xf6   :  { %v244_v54 = vrot.slane %v239_v52, %v3409_v51  ;;  %v248_v55 = vrot.slane %v239_v52, %v3415_v53  ;;  %v1522_v52 = vld [vmem:[#allocation7 + $0x1d8] sm:$0xff] }
  0xf7   :  { %996 = vmatpush1.bf16.msra.mxu0 %v2974_v56 }
  0xf8   :  { %997 = vmatprep.subr.bf16.mxu0 %v2979_v57 }
  0xfb   :  { %998 = vmatpush1.bf16.msra.mxu0 %v2977_v60 }
  0xfc   :  { %999 = vmatprep.subr.bf16.mxu0 %v2982_v61 }
  0xff   :  { %1000 = vmatpush1.bf16.msra.mxu0 %v2980_v0 }
 0x100   :  { %1001 = vmatprep.subr.bf16.mxu0 %v2985_v1  ;;  %v3085_v1 = vld [vmem:[#allocation6] ss:$8 sps:$4 sm:$0xff]  }
 0x103   :  { %1002 = vmatpush1.bf16.msra.mxu0 %v2983_v3  ;;  %v3090_v3 = vld [vmem:[#allocation6 + $0x14] ss:$8 sps:$4 sm:$0xff]  }
 0x104   :  { %1003 = vmatprep.subr.bf16.mxu0 %v2988_v4  ;;  %v3088_v4 = vld [vmem:[#allocation6 + $0x10] ss:$8 sps:$4 sm:$0xff]  }
 0x107   :  { %1004 = vmatpush1.bf16.msra.mxu0 %v2986_v5  ;;  %v3093_v5 = vld [vmem:[#allocation6 + $0x24] ss:$8 sps:$4 sm:$0xff]  }
 0x108   :  { %1014 = vmatprep.subr.bf16.mxu0 %v2991_v7  ;;  %v3096_v7 = vld [vmem:[#allocation6 + $0x34] ss:$8 sps:$4 sm:$0xff]  }
 0x10a   :  { %1006 = vmatmul.mubr.bf16.vlgmr.msra.gmra.mrb[0].mxu0 %v106_v9  ;;  %v3099_v9 = vld [vmem:[#allocation6 + $0x44] ss:$8 sps:$4 sm:$0xff]  }
 0x10b   :  { %1015 = vmatpush1.bf16.msra.mxu0 %v2989_v10  ;;  %1046 = vmatprep.mubr.bf16.mxu0 %v109_v11  ;;  %v3097_v10 = vld [vmem:[#allocation6 + $0x40] ss:$8 sps:$4 sm:$0xff]   ;;  %v3102_v11 = vld [vmem:[#allocation6 + $0x54] ss:$8 sps:$4 sm:$0xff]  }
 0x10c   :  { %1016 = vmatprep.subr.bf16.mxu0 %v2994_v12  ;;  %v3100_v12 = vld [vmem:[#allocation6 + $0x50] ss:$8 sps:$4 sm:$0xff]  }
 0x10f   :  { %1017 = vmatpush1.bf16.msra.mxu0 %v2992_v13  ;;  %v3105_v13 = vld [vmem:[#allocation6 + $0x64] ss:$8 sps:$4 sm:$0xff]  }
 0x110   :  { %1018 = vmatprep.subr.bf16.mxu0 %v2997_v14  ;;  %v3245_v14 = vmov 0  }
 0x113   :  { %1019 = vmatpush1.bf16.msra.mxu0 %v2995_v15  ;;  %v3103_v15 = vld [vmem:[#allocation6 + $0x60] ss:$8 sps:$4 sm:$0xff]  }
 0x114   :  { %1020 = vmatprep.subr.bf16.mxu0 %v3000_v16  ;;  %v3108_v16 = vld [vmem:[#allocation6 + $0x74] ss:$8 sps:$4 sm:$0xff]  }
 0x117   :  { %1021 = vmatpush1.bf16.msra.mxu0 %v2998_v17  ;;  %v3106_v17 = vld [vmem:[#allocation6 + $0x70] ss:$8 sps:$4 sm:$0xff]  }
 0x118   :  { %1022 = vmatprep.subr.bf16.mxu0 %v3003_v18  ;;  %v3419_v18 = vld [vmem:[#allocation7] sm:$0xff] }
 0x11b   :  { %1023 = vmatpush1.bf16.msra.mxu0 %v3001_v19  ;;  %v3421_v19 = vld [vmem:[#allocation7 + $0x20] sm:$0xff] }
 0x11c   :  { %1024 = vmatprep.subr.bf16.mxu0 %v3006_v20  ;;  %v2686_v20 = vcombine.low %v3419_v18, %v3421_v19 }
 0x11f   :  { %1025 = vmatpush1.bf16.msra.mxu0 %v3004_v21  ;;  %v2687_v21 = vcombine.high %v3419_v18, %v3421_v19 }
 0x120   :  { %1026 = vmatprep.subr.bf16.mxu0 %v3009_v22  ;;  %v1466_v22 = vld [vmem:[#allocation7 + $0x18] sm:$0xff] }
 0x123   :  { %1027 = vmatpush1.bf16.msra.mxu0 %v3007_v23  ;;  %v1470_v23 = vld [vmem:[#allocation7 + $0x38] sm:$0xff] }
 0x124   :  { %1028 = vmatprep.subr.bf16.mxu0 %v3012_v24  ;;  %v2692_v24 = vcombine.low %v1466_v22, %v1470_v23 }
 0x127   :  { %1029 = vmatpush1.bf16.msra.mxu0 %v3010_v25  ;;  %v2693_v25 = vcombine.high %v1466_v22, %v1470_v23 }
 0x128   :  { %1030 = vmatprep.subr.bf16.mxu0 %v3015_v26  ;;  %v1474_v26 = vld [vmem:[#allocation7 + $0x58] sm:$0xff] }
 0x12b   :  { %1031 = vmatpush1.bf16.msra.mxu0 %v3013_v27  ;;  %v1478_v27 = vld [vmem:[#allocation7 + $0x78] sm:$0xff] }
 0x12c   :  { %1032 = vmatprep.subr.bf16.mxu0 %v3018_v28  ;;  %v2700_v28 = vcombine.low %v1474_v26, %v1478_v27 }
 0x12f   :  { %1033 = vmatpush1.bf16.msra.mxu0 %v3016_v29  ;;  %v2701_v29 = vcombine.high %v1474_v26, %v1478_v27 }
 0x130   :  { %1034 = vmatprep.subr.bf16.mxu0 %v3021_v30  ;;  %v1482_v30 = vld [vmem:[#allocation7 + $0x98] sm:$0xff] }
 0x133   :  { %1035 = vmatpush1.bf16.msra.mxu0 %v3019_v31  ;;  %v1486_v31 = vld [vmem:[#allocation7 + $0xb8] sm:$0xff] }
 0x134   :  { %1036 = vmatprep.subr.bf16.mxu0 %v3024_v32  ;;  %v2708_v32 = vcombine.low %v1482_v30, %v1486_v31 }
 0x137   :  { %1037 = vmatpush1.bf16.msra.mxu0 %v3022_v33  ;;  %v2709_v33 = vcombine.high %v1482_v30, %v1486_v31  ;;  %v110_v31 = vld [vmem:[%s3507_s1] sm:$0xff] }
 0x138   :  { %1038 = vmatprep.subr.bf16.mxu0 %v3027_v34  ;;  %v1490_v34 = vld [vmem:[#allocation7 + $0xd8] sm:$0xff] }
 0x13b   :  { %1039 = vmatpush1.bf16.msra.mxu0 %v3025_v35  ;;  %v1494_v35 = vld [vmem:[#allocation7 + $0xf8] sm:$0xff] }
 0x13c   :  { %1040 = vmatprep.subr.bf16.mxu0 %v3030_v36  ;;  %v2716_v36 = vcombine.low %v1490_v34, %v1494_v35 }
 0x13f   :  { %1041 = vmatpush1.bf16.msra.mxu0 %v3028_v37  ;;  %v2717_v37 = vcombine.high %v1490_v34, %v1494_v35  ;;  %v1471_v34 = vld [vmem:[#allocation7 + $0x40] sm:$0xff] }
 0x140   :  { %1042 = vmatprep.subr.bf16.mxu0 %v3033_v38  ;;  %v1498_v38 = vld [vmem:[#allocation7 + $0x118] sm:$0xff]  ;;  %v1475_v35 = vld [vmem:[#allocation7 + $0x60] sm:$0xff] }
 0x143   :  { %1043 = vmatpush1.bf16.msra.mxu0 %v3031_v39  ;;  %v1502_v39 = vld [vmem:[#allocation7 + $0x138] sm:$0xff] }
 0x144   :  { %1044 = vmatprep.subr.bf16.mxu0 %v3036_v40  ;;  %v2724_v40 = vcombine.low %v1498_v38, %v1502_v39 }
 0x147   :  { %1045 = vmatpush1.bf16.msra.mxu0 %v3034_v41  ;;  %v2725_v41 = vcombine.high %v1498_v38, %v1502_v39  ;;  %v2695_v38 = vcombine.high %v1471_v34, %v1475_v35  ;;  %v1479_v39 = vld [vmem:[#allocation7 + $0x80] sm:$0xff] }
 0x148   :  { %2396 = vmatprep.subr.bf16.mxu0 %v2693_v25 }
 0x14a   :  { %1047 = vmatmul.mubr.bf16.vlgmr.msra.gmra.mrb[0].mxu0 %v108_v43  ;;  %v1510_v43 = vld [vmem:[#allocation7 + $0x178] sm:$0xff] }
 0x14b   :  { %2397 = vmatpush1.bf16.msra.mxu0 %v2692_v24  ;;  %v2732_v44 = vcombine.low %v1506_v42, %v1510_v43  ;;  %v2733_v45 = vcombine.high %v1506_v42, %v1510_v43  ;;  %v1487_v43 = vld [vmem:[#allocation7 + $0xc0] sm:$0xff] }
 0x14c   :  { %2398 = vmatprep.subr.bf16.mxu0 %v2701_v29 }
 0x14f   :  { %2399 = vmatpush1.bf16.msra.mxu0 %v2700_v28 }
 0x150   :  { %2400 = vmatprep.subr.bf16.mxu0 %v2709_v33 }
 0x153   :  { %2401 = vmatpush1.bf16.msra.mxu0 %v2708_v32 }
 0x154   :  { %2402 = vmatprep.subr.bf16.mxu0 %v2717_v37 }
 0x157   :  { %2403 = vmatpush1.bf16.msra.mxu0 %v2716_v36 }
 0x158   :  { %2404 = vmatprep.subr.bf16.mxu0 %v2725_v41  ;;  %v2694_v41 = vcombine.low %v1471_v34, %v1475_v35  ;;  %v1583_v35 = vld [vmem:[#allocation7 + $0x3c0] sm:$0xff] }
 0x15b   :  { %2405 = vmatpush1.bf16.msra.mxu0 %v2724_v40  ;;  %v1483_v40 = vld [vmem:[#allocation7 + $0xa0] sm:$0xff] }
 0x15c   :  { %2406 = vmatprep.subr.bf16.mxu0 %v2733_v45  ;;  %v2703_v42 = vcombine.high %v1479_v39, %v1483_v40  ;;  %v2702_v45 = vcombine.low %v1479_v39, %v1483_v40  ;;  %v1590_v39 = vld [vmem:[#allocation7 + $0x3f8] sm:$0xff] }
 0x15f   :  { %2407 = vmatpush1.bf16.msra.mxu0 %v2732_v44  ;;  %v1491_v44 = vld [vmem:[#allocation7 + $0xe0] sm:$0xff] }
 0x160   :  { %2408 = vmatprep.subr.bf16.mxu0 %v2741_v49  ;;  %v2711_v46 = vcombine.high %v1487_v43, %v1491_v44  ;;  %v2710_v49 = vcombine.low %v1487_v43, %v1491_v44  ;;  %v1464_v43 = vld [vmem:[#allocation7 + $0x8] sm:$0xff] }
 0x161   :  { %v1468_v44 = vld [vmem:[#allocation7 + $0x28] sm:$0xff] }
 0x163   :  { %2409 = vmatpush1.bf16.msra.mxu0 %v2740_v48  ;;  %v1499_v48 = vld [vmem:[#allocation7 + $0x120] sm:$0xff] }
 0x164   :  { %v2718_v18 = vcombine.low %v1495_v47, %v1499_v48 }
 0x21d   :  { %v1048_v56 = vpop.f32.mrb[0].mxu0 }
 0x21e   :  { %v2822_v57 = vadd.f32 %v1048_v56, %v244_v54  ;;  %v1050_v58 = vpop.f32.mrb[1].mxu0  ;;  %v1526_v54 = vld [vmem:[#allocation7 + $0x1f8] sm:$0xff] }
 0x21f   :  { %v2823_v59 = vadd.f32 %v1050_v58, %v248_v55  ;;  %v1052_v60 = vpop.f32.mrb[2].mxu0  ;;  %v2748_v55 = vcombine.low %v1522_v52, %v1526_v54  ;;  %v2749_v56 = vcombine.high %v1522_v52, %v1526_v54  ;;  %v1534_v58 = vld [vmem:[#allocation7 + $0x238] sm:$0xff]  ;;  %v2719_v52 = vcombine.high %v1495_v47, %v1499_v48  ;;  %v1503_v54 = vld [vmem:[#allocation7 + $0x140] sm:$0xff] }
 0x220   :  { %v1055_v61 = vmax.f32 %v2822_v57, 0.0  ;;  %v1053_v62 = vpop.f32.mrb[3].mxu0  ;;  %v1530_v57 = vld [vmem:[#allocation7 + $0x218] sm:$0xff]  ;;  %v1326_v47 = vld [vmem:[%s3513_s7] sm:$0x3] }
 0x221   :  { %v1056_v63 = vmax.f32 %v2823_v59, 0.0  ;;  %2410 = vmatprep.subr.bf16.mxu0 %v2749_v56  ;;  %v2756_v59 = vcombine.low %v1530_v57, %v1534_v58  ;;  %v2757_v60 = vcombine.high %v1530_v57, %v1534_v58  ;;  %v1542_v62 = vld [vmem:[#allocation7 + $0x278] sm:$0xff]  ;;  %v1515_v56 = vld [vmem:[#allocation7 + $0x1a0] sm:$0xff]  ;;  %v1331_v48 = vrot.slane %v1326_v47, %v3409_v51 }
 0x222   :  { %v1057_v2 = vpack.c.bf16 %v1055_v61, %v1055_v61  ;;  %2411 = vmatpush1.bf16.msra.mxu0 %v2748_v55  ;;  %v1538_v61 = vld [vmem:[#allocation7 + $0x258] sm:$0xff]  ;;  %v1507_v55 = vld [vmem:[#allocation7 + $0x160] sm:$0xff] }
 0x223   :  { %v1058_v0 = vpack.c.bf16 %v1056_v63, %v1056_v63  ;;  %2412 = vmatprep.subr.bf16.mxu0 %v2757_v60  ;;  %v2764_v63 = vcombine.low %v1538_v61, %v1542_v62  ;;  %v2727_v19 = vcombine.high %v1503_v54, %v1507_v55  ;;  %v2726_v57 = vcombine.low %v1503_v54, %v1507_v55  ;;  %v1523_v60 = vld [vmem:[#allocation7 + $0x1e0] sm:$0xff] }
 0x225   :  { %1295 = vmatprep.mubr.bf16.mxu1 %v1058_v0  ;;  %v2765_v0 = vcombine.high %v1538_v61, %v1542_v62 }
 0x226   :  { %1296 = vmatmul.mubr.bf16.vlgmr.msra.gmra.mrb[0].mxu1 %v1057_v2  ;;  %2413 = vmatpush1.bf16.msra.mxu0 %v2756_v59  ;;  %v1550_v2 = vld [vmem:[#allocation7 + $0x2b8] sm:$0xff]  ;;  %v1519_v59 = vld [vmem:[#allocation7 + $0x1c0] sm:$0xff] }
 0x227   :  { %1419 = vmatpush1.bf16.msra.mxu1 %v3085_v1  ;;  %1450 = vmatprep.mubr.bf16.mxu1 %v3245_v14  ;;  %v1546_v1 = vld [vmem:[#allocation7 + $0x298] sm:$0xff]  ;;  %v2743_v62 = vcombine.high %v1519_v59, %v1523_v60 }
 0x228   :  { %1420 = vmatprep.subr.bf16.mxu1 %v3090_v3  ;;  %2414 = vmatprep.subr.bf16.mxu0 %v2765_v0  ;;  %v2772_v3 = vcombine.low %v1546_v1, %v1550_v2  ;;  %v1574_v14 = vld [vmem:[#allocation7 + $0x378] sm:$0xff]  ;;  %v1531_v0 = vld [vmem:[#allocation7 + $0x220] sm:$0xff] }
 0x22a   :  { %2415 = vmatpush1.bf16.msra.mxu0 %v2764_v63  ;;  %v1527_v63 = vld [vmem:[#allocation7 + $0x200] sm:$0xff] }
 0x22b   :  { %1421 = vmatpush1.bf16.msra.mxu1 %v3088_v4  ;;  %v2773_v4 = vcombine.high %v1546_v1, %v1550_v2  ;;  %v2742_v1 = vcombine.low %v1519_v59, %v1523_v60  ;;  %v2751_v2 = vcombine.high %v1527_v63, %v1531_v0  ;;  %v1476_v59 = vld [vmem:[#allocation7 + $0x68] sm:$0xff] }
 0x22c   :  { %1422 = vmatprep.subr.bf16.mxu1 %v3093_v5  ;;  %v1554_v5 = vld [vmem:[#allocation7 + $0x2d8] sm:$0xff] }
 0x22d   :  { %2416 = vmatprep.subr.bf16.mxu0 %v2773_v4  ;;  %v1539_v4 = vld [vmem:[#allocation7 + $0x260] sm:$0xff] }
 0x22e   :  { %2417 = vmatpush1.bf16.msra.mxu0 %v2772_v3  ;;  %v1535_v3 = vld [vmem:[#allocation7 + $0x240] sm:$0xff] }
 0x22f   :  { %1423 = vmatpush1.bf16.msra.mxu1 %v3091_v6  ;;  %v1558_v6 = vld [vmem:[#allocation7 + $0x2f8] sm:$0xff] }
 0x230   :  { %1424 = vmatprep.subr.bf16.mxu1 %v3096_v7  ;;  %v2780_v7 = vcombine.low %v1554_v5, %v1558_v6 }
 0x233   :  { %1425 = vmatpush1.bf16.msra.mxu1 %v3094_v8  ;;  %v2781_v8 = vcombine.high %v1554_v5, %v1558_v6  ;;  %v2750_v5 = vcombine.low %v1527_v63, %v1531_v0  ;;  %v2759_v6 = vcombine.high %v1535_v3, %v1539_v4  ;;  %v1480_v63 = vld [vmem:[#allocation7 + $0x88] sm:$0xff] }
 0x234   :  { %1426 = vmatprep.subr.bf16.mxu1 %v3099_v9  ;;  %v1562_v9 = vld [vmem:[#allocation7 + $0x318] sm:$0xff]  ;;  %v1484_v0 = vld [vmem:[#allocation7 + $0xa8] sm:$0xff] }
 0x235   :  { %2418 = vmatprep.subr.bf16.mxu0 %v2781_v8  ;;  %v1547_v8 = vld [vmem:[#allocation7 + $0x2a0] sm:$0xff] }
 0x236   :  { %2419 = vmatpush1.bf16.msra.mxu0 %v2780_v7  ;;  %v1543_v7 = vld [vmem:[#allocation7 + $0x280] sm:$0xff] }
 0x237   :  { %1427 = vmatpush1.bf16.msra.mxu1 %v3097_v10  ;;  %v1566_v10 = vld [vmem:[#allocation7 + $0x338] sm:$0xff] }
 0x238   :  { %1428 = vmatprep.subr.bf16.mxu1 %v3102_v11  ;;  %v2788_v11 = vcombine.low %v1562_v9, %v1566_v10 }
 0x23b   :  { %1429 = vmatpush1.bf16.msra.mxu1 %v3100_v12  ;;  %v2789_v12 = vcombine.high %v1562_v9, %v1566_v10  ;;  %v2758_v9 = vcombine.low %v1535_v3, %v1539_v4  ;;  %v2767_v10 = vcombine.high %v1543_v7, %v1547_v8  ;;  %v1488_v3 = vld [vmem:[#allocation7 + $0xc8] sm:$0xff] }
 0x23c   :  { %1430 = vmatprep.subr.bf16.mxu1 %v3105_v13  ;;  %v1570_v13 = vld [vmem:[#allocation7 + $0x358] sm:$0xff]  ;;  %v1492_v4 = vld [vmem:[#allocation7 + $0xe8] sm:$0xff] }
 0x23d   :  { %2420 = vmatprep.subr.bf16.mxu0 %v2789_v12  ;;  %v1555_v12 = vld [vmem:[#allocation7 + $0x2e0] sm:$0xff] }
 0x23e   :  { %2421 = vmatpush1.bf16.msra.mxu0 %v2788_v11  ;;  %v1551_v11 = vld [vmem:[#allocation7 + $0x2c0] sm:$0xff] }
 0x23f   :  { %1431 = vmatpush1.bf16.msra.mxu1 %v3103_v15  ;;  %v2796_v15 = vcombine.low %v1570_v13, %v1574_v14 }
 0x240   :  { %1432 = vmatprep.subr.bf16.mxu1 %v3108_v16  ;;  %v2797_v16 = vcombine.high %v1570_v13, %v1574_v14  ;;  %v2766_v13 = vcombine.low %v1543_v7, %v1547_v8  ;;  %v2775_v14 = vcombine.high %v1551_v11, %v1555_v12  ;;  %v1496_v7 = vld [vmem:[#allocation7 + $0x108] sm:$0xff] }
 0x241   :  { %v1500_v8 = vld [vmem:[#allocation7 + $0x128] sm:$0xff] }
 0x242   :  { %2422 = vmatprep.subr.bf16.mxu0 %v2797_v16  ;;  %v1563_v16 = vld [vmem:[#allocation7 + $0x320] sm:$0xff] }
 0x243   :  { %1433 = vmatpush1.bf16.msra.mxu1 %v3106_v17  ;;  %2423 = vmatpush1.bf16.msra.mxu0 %v2796_v15  ;;  %v1091_v17 = vld [vmem:[%s3511_s5] sm:$0x3] }
 0x244   :  { %2273 = vmatprep.subr.bf16.mxu1 %v2687_v21  ;;  %v1096_v21 = vrot.slane %v1091_v17, %v3409_v51  ;;  %v1100_v22 = vrot.slane %v1091_v17, %v3415_v53  ;;  %v1559_v15 = vld [vmem:[#allocation7 + $0x300] sm:$0xff]  ;;  %v2774_v17 = vcombine.low %v1551_v11, %v1555_v12  ;;  %v1504_v11 = vld [vmem:[#allocation7 + $0x148] sm:$0xff] }
 0x245   :  { %v1508_v12 = vld [vmem:[#allocation7 + $0x168] sm:$0xff] }
 0x2f9   :  { %v1297_v23 = vpop.f32.mrb[0].mxu1 }
 0x2fa   :  { %v1298_v24 = vadd.f32 %v1297_v23, %v1096_v21  ;;  %v1299_v25 = vpop.f32.mrb[1].mxu1  ;;  %v2783_v21 = vcombine.high %v1559_v15, %v1563_v16  ;;  %v1571_v23 = vld [vmem:[#allocation7 + $0x360] sm:$0xff] }
 0x2fb   :  { %v1300_v26 = vadd.f32 %v1299_v25, %v1100_v22  ;;  %v1301_v27 = vpop.f32.mrb[2].mxu1  ;;  %v1567_v22 = vld [vmem:[#allocation7 + $0x340] sm:$0xff] }
 0x2fc   :  { %2493 = vst [vmem:[%s3517_s11] sm:$0xff] %v1298_v24  ;;  %v1302_v28 = vpop.f32.mrb[3].mxu1  ;;  %v2791_v25 = vcombine.high %v1567_v22, %v1571_v23  ;;  %v1575_v27 = vld [vmem:[#allocation7 + $0x380] sm:$0xff] }
 0x2fd   :  { %v1304_v29 = vmul.f32 0.5, %v1300_v26  ;;  %2494 = vst [vmem:[%s3518_s12] sm:$0xff] %v1300_v26  ;;  %v2790_v26 = vcombine.low %v1567_v22, %v1571_v23  ;;  %v1579_v28 = vld [vmem:[#allocation7 + $0x3a0] sm:$0xff]  ;;  %v1520_v22 = vld [vmem:[#allocation7 + $0x1c8] sm:$0xff] }
 0x2fe   :  { %v1524_v23 = vld [vmem:[#allocation7 + $0x1e8] sm:$0xff] }
 0x2ff   :  { %v1305_v30 = vmul.f32 1.442695, %v1304_v29  ;;  %v2799_v29 = vcombine.high %v1575_v27, %v1579_v28 }
 0x301   :  { %3109 = vpow2.f32 %v1305_v30  ;;  %v1578_v30 = vld [vmem:[#allocation7 + $0x398] sm:$0xff] }
 0x30b   :  { %v3110_v32 = vpop.eup %3109 }
 0x30c   :  { %v1307_v33 = vmul.f32 %v3110_v32, %v110_v31  ;;  %v1582_v31 = vld [vmem:[#allocation7 + $0x3b8] sm:$0xff]  ;;  %v2798_v32 = vcombine.low %v1575_v27, %v1579_v28  ;;  %v1532_v27 = vld [vmem:[#allocation7 + $0x228] sm:$0xff]  ;;  %v2744_v28 = vcombine.low %v1520_v22, %v1524_v23 }
 0x30d   :  { %v2804_v34 = vcombine.low %v1578_v30, %v1582_v31 }
 0x30e   :  { %v1308_v36 = vadd.f32 %v1307_v33, %v1298_v24  ;;  %v2782_v24 = vcombine.low %v1559_v15, %v1563_v16  ;;  %v2805_v33 = vcombine.high %v1578_v30, %v1582_v31  ;;  %v1512_v15 = vld [vmem:[#allocation7 + $0x188] sm:$0xff] }
 0x30f   :  { %v1516_v16 = vld [vmem:[#allocation7 + $0x1a8] sm:$0xff] }
 0x310   :  { %v1309_v37 = vpack.c.bf16 %v1308_v36, %v1308_v36  ;;  %2424 = vmatprep.subr.bf16.mxu0 %v2805_v33  ;;  %v1587_v36 = vld [vmem:[#allocation7 + $0x3e0] sm:$0xff]  ;;  %v1536_v30 = vld [vmem:[#allocation7 + $0x248] sm:$0xff] }
 0x311   :  { %2425 = vmatpush1.bf16.msra.mxu0 %v2804_v34  ;;  %v2806_v40 = vcombine.low %v1583_v35, %v1587_v36  ;;  %v1540_v31 = vld [vmem:[#allocation7 + $0x268] sm:$0xff] }
 0x312   :  { %1451 = vmatmul.mubr.bf16.vlgmr.msra.gmra.mrb[4].mxu1 %v1309_v37  ;;  %v2807_v37 = vcombine.high %v1583_v35, %v1587_v36  ;;  %v2761_v33 = vcombine.high %v1536_v30, %v1540_v31  ;;  %v1544_v34 = vld [vmem:[#allocation7 + $0x288] sm:$0xff]  ;;  %v2760_v36 = vcombine.low %v1536_v30, %v1540_v31  ;;  %v1529_v30 = vld [vmem:[#allocation7 + $0x210] sm:$0xff] }
 0x313   :  { %2274 = vmatpush1.bf16.msra.mxu1 %v2686_v20  ;;  %v1511_v20 = vld [vmem:[#allocation7 + $0x180] sm:$0xff]  ;;  %v1548_v35 = vld [vmem:[#allocation7 + $0x2a8] sm:$0xff]  ;;  %v1533_v31 = vld [vmem:[#allocation7 + $0x230] sm:$0xff] }
 0x314   :  { %2275 = vmatprep.subr.bf16.mxu1 %v2695_v38  ;;  %v2735_v58 = vcombine.high %v1511_v20, %v1515_v56  ;;  %v2734_v61 = vcombine.low %v1511_v20, %v1515_v56  ;;  %v1586_v38 = vld [vmem:[#allocation7 + $0x3d8] sm:$0xff] }
 0x317   :  { %2276 = vmatpush1.bf16.msra.mxu1 %v2694_v41  ;;  %v2813_v41 = vcombine.high %v1586_v38, %v1590_v39 }
 0x318   :  { %2277 = vmatprep.subr.bf16.mxu1 %v2703_v42  ;;  %v2812_v42 = vcombine.low %v1586_v38, %v1590_v39  ;;  %v1552_v38 = vld [vmem:[#allocation7 + $0x2c8] sm:$0xff] }
 0x319   :  { %2426 = vmatprep.subr.bf16.mxu0 %v2813_v41  ;;  %v1556_v39 = vld [vmem:[#allocation7 + $0x2e8] sm:$0xff] }
 0x31a   :  { %2427 = vmatpush1.bf16.msra.mxu0 %v2812_v42  ;;  %v2777_v41 = vcombine.high %v1552_v38, %v1556_v39  ;;  %v1560_v42 = vld [vmem:[#allocation7 + $0x308] sm:$0xff] }
 0x31b   :  { %2278 = vmatpush1.bf16.msra.mxu1 %v2702_v45  ;;  %v2689_v45 = vcombine.high %v1464_v43, %v1468_v44 }
 0x31c   :  { %2279 = vmatprep.subr.bf16.mxu1 %v2711_v46  ;;  %v2688_v46 = vcombine.low %v1464_v43, %v1468_v44  ;;  %v1564_v43 = vld [vmem:[#allocation7 + $0x328] sm:$0xff]  ;;  %v2776_v44 = vcombine.low %v1552_v38, %v1556_v39  ;;  %v1545_v38 = vld [vmem:[#allocation7 + $0x290] sm:$0xff] }
 0x31d   :  { %v1549_v39 = vld [vmem:[#allocation7 + $0x2b0] sm:$0xff] }
 0x31f   :  { %2280 = vmatpush1.bf16.msra.mxu1 %v2710_v49  ;;  %v1335_v49 = vrot.slane %v1326_v47, %v3415_v53  ;;  %v1572_v47 = vld [vmem:[#allocation7 + $0x368] sm:$0xff] }
 0x320   :  { %2281 = vmatprep.subr.bf16.mxu1 %v2719_v52 }
 0x323   :  { %2282 = vmatpush1.bf16.msra.mxu1 %v2718_v18 }
 0x324   :  { %2283 = vmatprep.subr.bf16.mxu1 %v2727_v19 }
 0x327   :  { %2284 = vmatpush1.bf16.msra.mxu1 %v2726_v57 }
 0x328   :  { %2285 = vmatprep.subr.bf16.mxu1 %v2735_v58  ;;  %v1472_v58 = vld [vmem:[#allocation7 + $0x48] sm:$0xff] }
 0x32b   :  { %2286 = vmatpush1.bf16.msra.mxu1 %v2734_v61 }
 0x32c   :  { %2287 = vmatprep.subr.bf16.mxu1 %v2743_v62  ;;  %v2697_v62 = vcombine.high %v1472_v58, %v1476_v59 }
 0x32f   :  { %2288 = vmatpush1.bf16.msra.mxu1 %v2742_v1  ;;  %v2696_v1 = vcombine.low %v1472_v58, %v1476_v59  ;;  %v1465_v58 = vld [vmem:[#allocation7 + $0x10] sm:$0xff] }
 0x330   :  { %2289 = vmatprep.subr.bf16.mxu1 %v2751_v2  ;;  %v2705_v2 = vcombine.high %v1480_v63, %v1484_v0  ;;  %v1469_v59 = vld [vmem:[#allocation7 + $0x30] sm:$0xff] }
 0x333   :  { %2290 = vmatpush1.bf16.msra.mxu1 %v2750_v5  ;;  %v2704_v5 = vcombine.low %v1480_v63, %v1484_v0  ;;  %v2691_v63 = vcombine.high %v1465_v58, %v1469_v59  ;;  %v1473_v0 = vld [vmem:[#allocation7 + $0x50] sm:$0xff] }
 0x334   :  { %2291 = vmatprep.subr.bf16.mxu1 %v2759_v6  ;;  %v2713_v6 = vcombine.high %v1488_v3, %v1492_v4 }
 0x337   :  { %2292 = vmatpush1.bf16.msra.mxu1 %v2758_v9  ;;  %v2712_v9 = vcombine.low %v1488_v3, %v1492_v4  ;;  %v1481_v4 = vld [vmem:[#allocation7 + $0x90] sm:$0xff] }
 0x338   :  { %2293 = vmatprep.subr.bf16.mxu1 %v2767_v10  ;;  %v2721_v10 = vcombine.high %v1496_v7, %v1500_v8 }
 0x33b   :  { %2294 = vmatpush1.bf16.msra.mxu1 %v2766_v13  ;;  %v2720_v13 = vcombine.low %v1496_v7, %v1500_v8  ;;  %v1489_v8 = vld [vmem:[#allocation7 + $0xd0] sm:$0xff] }
 0x33c   :  { %2295 = vmatprep.subr.bf16.mxu1 %v2775_v14  ;;  %v2729_v14 = vcombine.high %v1504_v11, %v1508_v12 }
 0x33f   :  { %2296 = vmatpush1.bf16.msra.mxu1 %v2774_v17  ;;  %v2728_v17 = vcombine.low %v1504_v11, %v1508_v12  ;;  %v1497_v12 = vld [vmem:[#allocation7 + $0x110] sm:$0xff] }
 0x340   :  { %2297 = vmatprep.subr.bf16.mxu1 %v2783_v21  ;;  %v2737_v21 = vcombine.high %v1512_v15, %v1516_v16 }
 0x343   :  { %2298 = vmatpush1.bf16.msra.mxu1 %v2782_v24  ;;  %v2736_v24 = vcombine.low %v1512_v15, %v1516_v16  ;;  %v1505_v16 = vld [vmem:[#allocation7 + $0x150] sm:$0xff] }
 0x344   :  { %2299 = vmatprep.subr.bf16.mxu1 %v2791_v25  ;;  %v2745_v25 = vcombine.high %v1520_v22, %v1524_v23  ;;  %v1513_v22 = vld [vmem:[#allocation7 + $0x190] sm:$0xff] }
 0x345   :  { %v1517_v23 = vld [vmem:[#allocation7 + $0x1b0] sm:$0xff] }
 0x347   :  { %2300 = vmatpush1.bf16.msra.mxu1 %v2790_v26  ;;  %v1528_v26 = vld [vmem:[#allocation7 + $0x208] sm:$0xff] }
 0x348   :  { %2301 = vmatprep.subr.bf16.mxu1 %v2799_v29  ;;  %v2753_v29 = vcombine.high %v1528_v26, %v1532_v27 }
 0x34b   :  { %2302 = vmatpush1.bf16.msra.mxu1 %v2798_v32  ;;  %v2752_v32 = vcombine.low %v1528_v26, %v1532_v27  ;;  %v1521_v26 = vld [vmem:[#allocation7 + $0x1d0] sm:$0xff] }
 0x34c   :  { %2303 = vmatprep.subr.bf16.mxu1 %v2807_v37  ;;  %v2769_v37 = vcombine.high %v1544_v34, %v1548_v35  ;;  %v1525_v27 = vld [vmem:[#allocation7 + $0x1f0] sm:$0xff] }
 0x34f   :  { %2304 = vmatpush1.bf16.msra.mxu1 %v2806_v40  ;;  %v2768_v40 = vcombine.low %v1544_v34, %v1548_v35  ;;  %v1537_v34 = vld [vmem:[#allocation7 + $0x250] sm:$0xff] }
 0x350   :  { %2314 = vmatprep.subr.bf16.mxu1 %v2689_v45  ;;  %v2785_v45 = vcombine.high %v1560_v42, %v1564_v43  ;;  %v1541_v35 = vld [vmem:[#allocation7 + $0x270] sm:$0xff] }
 0x3e5   :  { %v1452_v52 = vpop.f32.mrb[4].mxu1 }
 0x3e6   :  { %v1453_v54 = vadd.f32 %v1452_v52, %v1331_v48  ;;  %v1454_v55 = vpop.f32.mrb[5].mxu1  ;;  %v2784_v48 = vcombine.low %v1560_v42, %v1564_v43  ;;  %v1576_v52 = vld [vmem:[#allocation7 + $0x388] sm:$0xff]  ;;  %v1553_v42 = vld [vmem:[#allocation7 + $0x2d0] sm:$0xff] }
 0x3e7   :  { %v1455_v18 = vadd.f32 %v1454_v55, %v1335_v49  ;;  %v1456_v19 = vpop.f32.mrb[6].mxu1  ;;  %v1557_v43 = vld [vmem:[#allocation7 + $0x2f0] sm:$0xff] }
 0x3e8   :  { %v1459_v20 = vmax.f32 %v1453_v54, 0.0  ;;  %v1457_v56 = vpop.f32.mrb[7].mxu1  ;;  %v1580_v54 = vld [vmem:[#allocation7 + $0x3a8] sm:$0xff] }
 0x3e9   :  { %v1460_v57 = vmax.f32 %v1455_v18, 0.0  ;;  %v2801_v18 = vcombine.high %v1576_v52, %v1580_v54  ;;  %v1584_v19 = vld [vmem:[#allocation7 + $0x3c8] sm:$0xff]  ;;  %v2800_v56 = vcombine.low %v1576_v52, %v1580_v54  ;;  %v1569_v52 = vld [vmem:[#allocation7 + $0x350] sm:$0xff] }
 0x3ea   :  { %v3451_v61 = vpack.c.bf16 %v1459_v20, %v1459_v20  ;;  %v1588_v20 = vld [vmem:[#allocation7 + $0x3e8] sm:$0xff]  ;;  %v1573_v54 = vld [vmem:[#allocation7 + $0x370] sm:$0xff] }
 0x3eb   :  { %v3449_v60 = vpack.c.bf16 %v1460_v57, %v1460_v57  ;;  %v2809_v57 = vcombine.high %v1584_v19, %v1588_v20 }
 0x3ed   :  { %2305 = vmatprep.mubr.bf16.mxu1 %v3449_v60  ;;  %2428 = vmatprep.mubr.bf16.mxu0 %v3449_v60 }
 0x3ee   :  { %2306 = vmatmul.mubr.bf16.vlgmr.msra.gmra.mrb[8].mxu1 %v3451_v61  ;;  %2429 = vmatmul.mubr.bf16.vlgmr.msra.gmra.mrb[4].mxu0 %v3451_v61 }
 0x3ef   :  { %2315 = vmatpush1.bf16.msra.mxu1 %v2688_v46  ;;  %2346 = vmatprep.mubr.bf16.mxu1 %v3449_v60  ;;  %v1568_v46 = vld [vmem:[#allocation7 + $0x348] sm:$0xff] }
 0x3f0   :  { %2316 = vmatprep.subr.bf16.mxu1 %v2697_v62  ;;  %v2793_v49 = vcombine.high %v1568_v46, %v1572_v47  ;;  %v2792_v55 = vcombine.low %v1568_v46, %v1572_v47  ;;  %v2808_v62 = vcombine.low %v1584_v19, %v1588_v20  ;;  %v1561_v46 = vld [vmem:[#allocation7 + $0x310] sm:$0xff] }
 0x3f1   :  { %v1565_v47 = vld [vmem:[#allocation7 + $0x330] sm:$0xff] }
 0x3f2   :  { %v1577_v19 = vld [vmem:[#allocation7 + $0x390] sm:$0xff] }
 0x3f3   :  { %2317 = vmatpush1.bf16.msra.mxu1 %v2696_v1  ;;  %v1477_v1 = vld [vmem:[#allocation7 + $0x70] sm:$0xff] }
 0x3f4   :  { %2318 = vmatprep.subr.bf16.mxu1 %v2705_v2  ;;  %v2690_v2 = vcombine.low %v1465_v58, %v1469_v59  ;;  %v2699_v3 = vcombine.high %v1473_v0, %v1477_v1  ;;  %v1581_v20 = vld [vmem:[#allocation7 + $0x3b0] sm:$0xff] }
 0x3f5   :  { %v1585_v58 = vld [vmem:[#allocation7 + $0x3d0] sm:$0xff] }
 0x3f6   :  { %v1589_v59 = vld [vmem:[#allocation7 + $0x3f0] sm:$0xff] }
 0x3f7   :  { %2319 = vmatpush1.bf16.msra.mxu1 %v2704_v5  ;;  %v1485_v5 = vld [vmem:[#allocation7 + $0xb0] sm:$0xff] }
 0x3f8   :  { %2320 = vmatprep.subr.bf16.mxu1 %v2713_v6  ;;  %v2698_v6 = vcombine.low %v1473_v0, %v1477_v1  ;;  %v2707_v7 = vcombine.high %v1481_v4, %v1485_v5  ;;  %v2810_v0 = vcombine.low %v1585_v58, %v1589_v59  ;;  %v1619_v1 = vsub.s32 6, %v3406_v50 }
 0x3fb   :  { %2321 = vmatpush1.bf16.msra.mxu1 %v2712_v9  ;;  %v1493_v9 = vld [vmem:[#allocation7 + $0xf0] sm:$0xff] }
 0x3fc   :  { %2322 = vmatprep.subr.bf16.mxu1 %v2721_v10  ;;  %v2706_v10 = vcombine.low %v1481_v4, %v1485_v5  ;;  %v2715_v11 = vcombine.high %v1489_v8, %v1493_v9 }
 0x3ff   :  { %2323 = vmatpush1.bf16.msra.mxu1 %v2720_v13  ;;  %v1501_v13 = vld [vmem:[#allocation7 + $0x130] sm:$0xff] }
 0x400   :  { %2324 = vmatprep.subr.bf16.mxu1 %v2729_v14  ;;  %v2714_v14 = vcombine.low %v1489_v8, %v1493_v9  ;;  %v2723_v15 = vcombine.high %v1497_v12, %v1501_v13 }
 0x403   :  { %2325 = vmatpush1.bf16.msra.mxu1 %v2728_v17  ;;  %v1509_v17 = vld [vmem:[#allocation7 + $0x170] sm:$0xff] }
 0x404   :  { %2326 = vmatprep.subr.bf16.mxu1 %v2737_v21  ;;  %v2722_v21 = vcombine.low %v1497_v12, %v1501_v13 }
 0x407   :  { %2327 = vmatpush1.bf16.msra.mxu1 %v2736_v24  ;;  %v2730_v24 = vcombine.low %v1505_v16, %v1509_v17 }
 0x408   :  { %2328 = vmatprep.subr.bf16.mxu1 %v2745_v25  ;;  %v2739_v25 = vcombine.high %v1513_v22, %v1517_v23 }
 0x40b   :  { %2329 = vmatpush1.bf16.msra.mxu1 %v2744_v28  ;;  %v2738_v28 = vcombine.low %v1513_v22, %v1517_v23 }
 0x40c   :  { %2330 = vmatprep.subr.bf16.mxu1 %v2753_v29  ;;  %v2747_v29 = vcombine.high %v1521_v26, %v1525_v27 }
 0x40f   :  { %2331 = vmatpush1.bf16.msra.mxu1 %v2752_v32  ;;  %v2746_v32 = vcombine.low %v1521_v26, %v1525_v27 }
 0x410   :  { %2332 = vmatprep.subr.bf16.mxu1 %v2761_v33  ;;  %v2755_v33 = vcombine.high %v1529_v30, %v1533_v31 }
 0x413   :  { %2333 = vmatpush1.bf16.msra.mxu1 %v2760_v36  ;;  %v2754_v36 = vcombine.low %v1529_v30, %v1533_v31 }
 0x414   :  { %2334 = vmatprep.subr.bf16.mxu1 %v2769_v37  ;;  %v2763_v37 = vcombine.high %v1537_v34, %v1541_v35 }
 0x417   :  { %2335 = vmatpush1.bf16.msra.mxu1 %v2768_v40  ;;  %v2762_v40 = vcombine.low %v1537_v34, %v1541_v35  ;;  %v1603_v35 = vsub.s32 2, %v3406_v50 }
 0x418   :  { %2336 = vmatprep.subr.bf16.mxu1 %v2777_v41  ;;  %v2771_v41 = vcombine.high %v1545_v38, %v1549_v39 }
 0x41b   :  { %2337 = vmatpush1.bf16.msra.mxu1 %v2776_v44  ;;  %v2770_v44 = vcombine.low %v1545_v38, %v1549_v39 }
 0x41c   :  { %2338 = vmatprep.subr.bf16.mxu1 %v2785_v45  ;;  %v2779_v45 = vcombine.high %v1553_v42, %v1557_v43 }
 0x41f   :  { %2339 = vmatpush1.bf16.msra.mxu1 %v2784_v48  ;;  %v2778_v48 = vcombine.low %v1553_v42, %v1557_v43 }
 0x420   :  { %2340 = vmatprep.subr.bf16.mxu1 %v2793_v49  ;;  %v2787_v49 = vcombine.high %v1561_v46, %v1565_v47 }
 0x423   :  { %2341 = vmatpush1.bf16.msra.mxu1 %v2792_v55  ;;  %v2786_v55 = vcombine.low %v1561_v46, %v1565_v47 }
 0x424   :  { %2342 = vmatprep.subr.bf16.mxu1 %v2801_v18  ;;  %v2795_v18 = vcombine.high %v1569_v52, %v1573_v54 }
 0x427   :  { %2343 = vmatpush1.bf16.msra.mxu1 %v2800_v56  ;;  %v2794_v56 = vcombine.low %v1569_v52, %v1573_v54 }
 0x428   :  { %2344 = vmatprep.subr.bf16.mxu1 %v2809_v57  ;;  %v2803_v57 = vcombine.high %v1577_v19, %v1581_v20 }
 0x42b   :  { %2345 = vmatpush1.bf16.msra.mxu1 %v2808_v62  ;;  %v2802_v62 = vcombine.low %v1577_v19, %v1581_v20  ;;  %v1615_v19 = vsub.s32 5, %v3406_v50 }
 0x42c   :  { %2355 = vmatprep.subr.bf16.mxu1 %v2691_v63  ;;  %v2811_v63 = vcombine.high %v1585_v58, %v1589_v59 }
 0x42e   :  { %2347 = vmatmul.mubr.bf16.vlgmr.msra.gmra.mrb[12].mxu1 %v3451_v61 }
 0x42f   :  { %2356 = vmatpush1.bf16.msra.mxu1 %v2690_v2  ;;  %2387 = vmatprep.mubr.bf16.mxu1 %v3449_v60  ;;  %v2731_v60 = vcombine.high %v1505_v16, %v1509_v17  ;;  %v3465_v2 = vld [vmem:[%s3515_s9] sm:$0xff] }
 0x430   :  { %2357 = vmatprep.subr.bf16.mxu1 %v2699_v3  ;;  %v1623_v3 = vsub.s32 7, %v3406_v50  ;;  %v1596_v4 = vrot.slane %v3465_v2, %v3409_v51  ;;  %v1620_v5 = vrot.slane %v3465_v2, %v1619_v1 }
 0x433   :  { %2358 = vmatpush1.bf16.msra.mxu1 %v2698_v6  ;;  %v1600_v6 = vrot.slane %v3465_v2, %v3415_v53 }
 0x434   :  { %2359 = vmatprep.subr.bf16.mxu1 %v2707_v7  ;;  %v1624_v7 = vrot.slane %v3465_v2, %v1623_v3 }
 0x437   :  { %2360 = vmatpush1.bf16.msra.mxu1 %v2706_v10 }
 0x438   :  { %2361 = vmatprep.subr.bf16.mxu1 %v2715_v11 }
 0x43b   :  { %2362 = vmatpush1.bf16.msra.mxu1 %v2714_v14 }
 0x43c   :  { %2363 = vmatprep.subr.bf16.mxu1 %v2723_v15 }
 0x43f   :  { %2364 = vmatpush1.bf16.msra.mxu1 %v2722_v21 }
 0x440   :  { %2365 = vmatprep.subr.bf16.mxu1 %v2731_v60 }
 0x443   :  { %2366 = vmatpush1.bf16.msra.mxu1 %v2730_v24 }
 0x444   :  { %2367 = vmatprep.subr.bf16.mxu1 %v2739_v25 }
 0x447   :  { %2368 = vmatpush1.bf16.msra.mxu1 %v2738_v28 }
 0x448   :  { %2369 = vmatprep.subr.bf16.mxu1 %v2747_v29 }
 0x44b   :  { %2370 = vmatpush1.bf16.msra.mxu1 %v2746_v32 }
 0x44c   :  { %2371 = vmatprep.subr.bf16.mxu1 %v2755_v33 }
 0x44f   :  { %2372 = vmatpush1.bf16.msra.mxu1 %v2754_v36  ;;  %v1607_v36 = vsub.s32 3, %v3406_v50 }
 0x450   :  { %2373 = vmatprep.subr.bf16.mxu1 %v2763_v37  ;;  %v1604_v37 = vrot.slane %v3465_v2, %v1603_v35 }
 0x451   :  { %v1608_v38 = vrot.slane %v3465_v2, %v1607_v36 }
 0x453   :  { %2374 = vmatpush1.bf16.msra.mxu1 %v2762_v40 }
 0x454   :  { %2375 = vmatprep.subr.bf16.mxu1 %v2771_v41 }
 0x457   :  { %2376 = vmatpush1.bf16.msra.mxu1 %v2770_v44 }
 0x458   :  { %2377 = vmatprep.subr.bf16.mxu1 %v2779_v45 }
 0x45b   :  { %2378 = vmatpush1.bf16.msra.mxu1 %v2778_v48 }
 0x45c   :  { %2379 = vmatprep.subr.bf16.mxu1 %v2787_v49 }
 0x45f   :  { %2380 = vmatpush1.bf16.msra.mxu1 %v2786_v55 }
 0x460   :  { %2381 = vmatprep.subr.bf16.mxu1 %v2795_v18  ;;  %v1611_v18 = vsub.s32 4, %v3406_v50 }
 0x462   :  { %v1612_v20 = vrot.slane %v3465_v2, %v1611_v18 }
 0x463   :  { %2382 = vmatpush1.bf16.msra.mxu1 %v2794_v56  ;;  %v1616_v56 = vrot.slane %v3465_v2, %v1615_v19 }
 0x464   :  { %2383 = vmatprep.subr.bf16.mxu1 %v2803_v57 }
 0x467   :  { %2384 = vmatpush1.bf16.msra.mxu1 %v2802_v62 }
 0x468   :  { %2385 = vmatprep.subr.bf16.mxu1 %v2811_v63 }
 0x46b   :  { %2386 = vmatpush1.bf16.msra.mxu1 %v2810_v0 }
 0x46e   :  { %2388 = vmatmul.mubr.bf16.vlgmr.msra.gmra.mrb[16].mxu1 %v3451_v61 }
 0x4c1   :  { %v2307_v61 = vpop.f32.mrb[8].mxu1  ;;  %v2430_v8 = vpop.f32.mrb[4].mxu0 }
 0x4c2   :  { %v2308_v9 = vadd.f32 %v2307_v61, %v1596_v4  ;;  %v2431_v10 = vadd.f32 %v2430_v8, %v1620_v5  ;;  %v2309_v11 = vpop.f32.mrb[9].mxu1  ;;  %v2432_v12 = vpop.f32.mrb[5].mxu0 }
 0x4c3   :  { %v2310_v13 = vadd.f32 %v2309_v11, %v1600_v6  ;;  %v2433_v14 = vadd.f32 %v2432_v12, %v1624_v7  ;;  %v2311_v15 = vpop.f32.mrb[10].mxu1  ;;  %v2434_v16 = vpop.f32.mrb[6].mxu0 }
 0x4c4   :  { %v2814_v17 = vmul.f32 -1.442695, %v2308_v9  ;;  %v2820_v21 = vmul.f32 -1.442695, %v2431_v10  ;;  %v2312_v51 = vpop.f32.mrb[11].mxu1  ;;  %v2435_v60 = vpop.f32.mrb[7].mxu0 }
 0x4c5   :  { %v2815_v22 = vmul.f32 -1.442695, %v2310_v13  ;;  %v2821_v23 = vmul.f32 -1.442695, %v2433_v14 }
 0x4c6   :  { %3111 = vpow2.f32 %v2814_v17 }
 0x4c7   :  { %3113 = vpow2.f32 %v2820_v21 }
 0x4c8   :  { %3115 = vpow2.f32 %v2815_v22 }
 0x4c9   :  { %3117 = vpow2.f32 %v2821_v23 }
 0x4d0   :  { %v3112_v53 = vpop.eup %3111 }
 0x4d1   :  { %v3114_v24 = vpop.eup %3113  ;;  %v2461_v25 = vadd.f32 1.0, %v3112_v53 }
 0x4d2   :  { %v3116_v26 = vpop.eup %3115  ;;  %v2467_v27 = vadd.f32 1.0, %v3114_v24 }
 0x4d3   :  { %v3118_v28 = vpop.eup %3117  ;;  %3119 = vrcp.f32 %v2461_v25  ;;  %v2462_v29 = vadd.f32 1.0, %v3116_v26 }
 0x4d4   :  { %3121 = vrcp.f32 %v2467_v27  ;;  %v2468_v30 = vadd.f32 1.0, %v3118_v28 }
 0x4d5   :  { %3123 = vrcp.f32 %v2462_v29 }
 0x4d6   :  { %3125 = vrcp.f32 %v2468_v30 }
 0x4dd   :  { %v3120_v31 = vpop.eup %3119 }
 0x4de   :  { %v3122_v32 = vpop.eup %3121  ;;  %2485 = vst [vmem:[%s3516_s10] sm:$0xff] %v3120_v31 }
 0x4df   :  { %v3124_v33 = vpop.eup %3123  ;;  %2491 = vst [vmem:[%s3516_s10 + $0x30] sm:$0xff] %v3122_v32 }
 0x4e0   :  { %v3126_v34 = vpop.eup %3125  ;;  %2486 = vst [vmem:[%s3516_s10 + $0x8] sm:$0xff] %v3124_v33 }
 0x4e1   :  { %2492 = vst [vmem:[%s3516_s10 + $0x38] sm:$0xff] %v3126_v34 }
 0x501   :  { %v2348_v39 = vpop.f32.mrb[12].mxu1 }
 0x502   :  { %v2349_v40 = vadd.f32 %v2348_v39, %v1604_v37  ;;  %v2350_v41 = vpop.f32.mrb[13].mxu1 }
 0x503   :  { %v2351_v42 = vadd.f32 %v2350_v41, %v1608_v38  ;;  %v2352_v43 = vpop.f32.mrb[14].mxu1 }
 0x504   :  { %v2816_v44 = vmul.f32 -1.442695, %v2349_v40  ;;  %v2353_v45 = vpop.f32.mrb[15].mxu1 }
 0x505   :  { %v2817_v46 = vmul.f32 -1.442695, %v2351_v42 }
 0x506   :  { %3127 = vpow2.f32 %v2816_v44 }
 0x507   :  { %3129 = vpow2.f32 %v2817_v46 }
 0x510   :  { %v3128_v47 = vpop.eup %3127 }
 0x511   :  { %v3130_v48 = vpop.eup %3129  ;;  %v2463_v49 = vadd.f32 1.0, %v3128_v47 }
 0x512   :  { %v2464_v52 = vadd.f32 1.0, %v3130_v48 }
 0x513   :  { %3131 = vrcp.f32 %v2463_v49 }
 0x514   :  { %3133 = vrcp.f32 %v2464_v52 }
 0x51d   :  { %v3132_v54 = vpop.eup %3131 }
 0x51e   :  { %v3134_v55 = vpop.eup %3133  ;;  %2487 = vst [vmem:[%s3516_s10 + $0x10] sm:$0xff] %v3132_v54 }
 0x51f   :  { %2488 = vst [vmem:[%s3516_s10 + $0x18] sm:$0xff] %v3134_v55 }
 0x541   :  { %v2389_v57 = vpop.f32.mrb[16].mxu1 }
 0x542   :  { %v2390_v58 = vadd.f32 %v2389_v57, %v1612_v20  ;;  %v2391_v59 = vpop.f32.mrb[17].mxu1 }
 0x543   :  { %v2392_v62 = vadd.f32 %v2391_v59, %v1616_v56  ;;  %v2393_v63 = vpop.f32.mrb[18].mxu1 }
 0x544   :  { %v2818_v0 = vmul.f32 -1.442695, %v2390_v58  ;;  %v2394_v1 = vpop.f32.mrb[19].mxu1 }
 0x545   :  { %v2819_v3 = vmul.f32 -1.442695, %v2392_v62 }
 0x546   :  { %3135 = vpow2.f32 %v2818_v0 }
 0x547   :  { %3137 = vpow2.f32 %v2819_v3 }
 0x550   :  { %v3136_v4 = vpop.eup %3135 }
 0x551   :  { %v3138_v5 = vpop.eup %3137  ;;  %v2465_v6 = vadd.f32 1.0, %v3136_v4 }
 0x552   :  { %v2466_v7 = vadd.f32 1.0, %v3138_v5 }
 0x553   :  { %3139 = vrcp.f32 %v2465_v6 }
 0x554   :  { %3141 = vrcp.f32 %v2466_v7 }
 0x55d   :  { %v3140_v50 = vpop.eup %3139 }
 0x55e   :  { %v3142_v61 = vpop.eup %3141  ;;  %2489 = vst [vmem:[%s3516_s10 + $0x20] sm:$0xff] %v3140_v50 }
 0x55f   :  { %2490 = vst [vmem:[%s3516_s10 + $0x28] sm:$0xff] %v3142_v61 }
 0x560   :  { %2507 = vsyncpa [#allocation3], 1 }
 0x561   :  { %2508 = vsyncpa [#allocation5], 1 }
 0x562   :  { %2509 = vsyncpa [#allocation8], 1 }

</bundles_post_ra>
